<compile_context>
chip_gen: v5e
topology: v5e:2x2
jax: 0.10.0
libtpu: 0.0.40
codegen_flags: <defaults>
</compile_context>

<pallas_src>
import math
import jax
import jax.numpy as jnp
from jax.experimental import pallas as pl
from jax.experimental.pallas import tpu as pltpu


def _gelu_exact(x):
    # nn.GELU() default (approximate='none'): 0.5 * x * (1 + erf(x / sqrt(2)))
    return 0.5 * x * (1.0 + jax.lax.erf(x * 0.7071067811865475))


def res_group_adapter_kernel(x_ref, w1t_ref, b1_ref, w2t_ref, b2_ref, o_ref):
    """One grid step: a block of `bblk` images, each processed as a lane-dense [C, N] tile."""
    w1t = w1t_ref[...]            # (heads*hid, C)   MXU dtype (bf16 if x is bf16, else f32)
    b1 = b1_ref[...]              # (heads*hid, 1)   f32
    w2t = w2t_ref[...]            # (C, heads*hid)   MXU dtype; learned 'scale' folded in
    b2 = b2_ref[...]              # (C, 1)           f32;      learned 'scale' folded in
    bblk = x_ref.shape[0]
    # Static (unrolled) loop over the images of this block -- each dot is a plain 2-D MXU
    # matmul over the [C, N] tile with f32 accumulation; elementwise tail stays in f32.
    for i in range(bblk):
        xb = x_ref[i]                                              # (C, N), native dtype
        xm = xb.astype(w1t.dtype)                                  # no-op when dtypes match
        h = jnp.dot(w1t, xm, preferred_element_type=jnp.float32) + b1
        g = _gelu_exact(h)                                         # (heads*hid, N), f32
        y = jnp.dot(w2t, g.astype(w2t.dtype), preferred_element_type=jnp.float32) + b2
        o_ref[i] = (xb.astype(jnp.float32) + y).astype(o_ref.dtype)


def _build_blockdiag_weights(w1, b1, w2, b2, heads):
    """Fold the shared per-head MLP into block-diagonal full-channel weights.

    Channel layout follows einops 'b n (c h) -> (b h) n c': full channel ch = c_idx*heads + h.
    Returns weights pre-transposed for the [C, N] (channels x tokens) compute layout.
    """
    c, hid = w1.shape
    C = c * heads
    eye = jnp.eye(heads, dtype=jnp.float32)
    w1f = w1.astype(jnp.float32)
    w2f = w2.astype(jnp.float32)
    # w1_full[c_idx*heads + g, h*hid + j] = w1[c_idx, j] * (g == h)
    w1_full = jnp.einsum('cj,gh->cghj', w1f, eye).reshape(C, heads * hid)
    # w2_full[g*hid + j, c_idx*heads + h] = w2[j, c_idx] * (g == h)
    w2_full = jnp.einsum('jc,gh->gjch', w2f, eye).reshape(heads * hid, C)
    b1_full = jnp.tile(b1.astype(jnp.float32), heads)      # [g*hid + j]       = b1[j]
    b2_full = jnp.repeat(b2.astype(jnp.float32), heads)    # [c_idx*heads + h] = b2[c_idx]
    return (w1_full.T, b1_full.reshape(heads * hid, 1),
            w2_full.T, b2_full.reshape(C, 1))


def _default_parallel_blocks():
    """2 'parallel' grid blocks on megacore chips (v4/v5p/v7x), 1 on single-TC chips."""
    try:
        kind = jax.devices()[0].device_kind.lower()
    except Exception:
        return 2
    if any(tag in kind for tag in ("v2", "v3", "v5 lite", "v5e", "v6 lite", "v6e")):
        return 1          # one TensorCore per device: a single big block is strictly best
    return 2              # v4 / v5p / v7x: two TensorCores share the "parallel" grid axis


def res_group_adapter(x, w1, b1, w2, b2, scale, *, heads,
                      target_parallel_blocks=None, max_block_bytes=2 << 20):
    """x: [B, C, H, W] NCHW. w1: [c, c*sf], b1: [c*sf], w2: [c*sf, c], b2: [c], scale: [1]."""
    B, C, H, W = x.shape
    hid_total = heads * w1.shape[1]
    N = H * W

    # NCHW is already [B, C, H*W]-contiguous: this reshape is free (no transpose glue).
    x3 = x.reshape(B, C, N)

    w1t, b1c, w2t, b2c = _build_blockdiag_weights(w1, b1, w2, b2, heads)
    # adapter_weight == 'scale': fold the learned scalar into the 2nd matmul + bias (host side).
    s = scale.astype(jnp.float32)[0]
    w2t = w2t * s
    b2c = b2c * s
    # Feed the MXU in x's dtype: bf16 operands (f32 accumulation) on bf16 inputs; f32 otherwise.
    mxu_dtype = jnp.bfloat16 if x.dtype == jnp.bfloat16 else jnp.float32
    w1t = w1t.astype(mxu_dtype)
    w2t = w2t.astype(mxu_dtype)

    # Grid sizing: as few steps as possible (amortize ~0.35us/step), but keep >=2 parallel
    # blocks on megacore chips, and cap each step's x block at ~max_block_bytes.
    if target_parallel_blocks is None:
        target_parallel_blocks = _default_parallel_blocks()
    per_batch_bytes = C * N * x3.dtype.itemsize
    nb = max(min(B, target_parallel_blocks), pl.cdiv(B * per_batch_bytes, max_block_bytes))
    nb = min(nb, B)
    while B % nb:             # keep blocks uniform
        nb += 1
    bblk = B // nb

    out = pl.pallas_call(
        res_group_adapter_kernel,
        out_shape=jax.ShapeDtypeStruct((B, C, N), x.dtype),
        grid=(nb,),
        in_specs=[
            pl.BlockSpec((bblk, C, N), lambda b: (b, 0, 0)),        # x block (lane dim = N)
            pl.BlockSpec((hid_total, C), lambda b: (0, 0)),         # W1^T (block-diag, full)
            pl.BlockSpec((hid_total, 1), lambda b: (0, 0)),         # b1 column
            pl.BlockSpec((C, hid_total), lambda b: (0, 0)),         # W2^T (block-diag, scaled)
            pl.BlockSpec((C, 1), lambda b: (0, 0)),                 # b2 column (scaled)
        ],
        out_specs=pl.BlockSpec((bblk, C, N), lambda b: (b, 0, 0)),
        input_output_aliases={0: 0},                                # residual written in place
        compiler_params=pltpu.CompilerParams(
            dimension_semantics=("parallel",)),
    )(x3, w1t, b1c, w2t, b2c)

    return out.reshape(B, C, H, W)


def _reference(x, w1, b1, w2, b2, scale, heads):
    """Pure-JAX reference mirroring the PyTorch forward exactly (with the rearranges)."""
    B, C, H, W = x.shape
    c = C // heads
    xf = x.astype(jnp.float32)
    xt = jnp.transpose(xf, (0, 2, 3, 1)).reshape(B, H * W, C)
    xt = xt.reshape(B, H * W, c, heads)
    xt = jnp.transpose(xt, (0, 3, 1, 2)).reshape(B * heads, H * W, c)
    hp = 'highest'
    y = jnp.matmul(_gelu_exact(jnp.matmul(xt, w1, precision=hp) + b1), w2, precision=hp) + b2
    y = y * scale[0]
    y = y.reshape(B, heads, H * W, c)
    y = jnp.transpose(y, (0, 2, 3, 1)).reshape(B, H * W, C)
    y = jnp.transpose(y.reshape(B, H, W, C), (0, 3, 1, 2))
    return (xf + y).astype(x.dtype)


if __name__ == "__main__":
    key = jax.random.PRNGKey(0)
    B, dim, H, W = 2, 32, 16, 16           # x: [2, 32, 16, 16] NCHW
    heads, scale_factor = 4, 2
    c = dim // heads                        # dim_mlp = 8
    hid = c * scale_factor                  # 16

    k1, k2, k3, k4, kx = jax.random.split(key, 5)
    # kaiming_uniform_(a=sqrt(5)) -> U(-1/sqrt(fan_in), 1/sqrt(fan_in)); biases ~ N(0, 1)
    w1 = jax.random.uniform(k1, (c, hid), jnp.float32, -1.0 / math.sqrt(c), 1.0 / math.sqrt(c))
    b1 = jax.random.normal(k2, (hid,), jnp.float32)
    w2 = jax.random.uniform(k3, (hid, c), jnp.float32, -1.0 / math.sqrt(hid), 1.0 / math.sqrt(hid))
    b2 = jax.random.normal(k4, (c,), jnp.float32)
    scale = jnp.ones((1,), jnp.float32)     # adapter_weight='scale', Parameter filled with 1

    x = jax.random.normal(kx, (B, dim, H, W), jnp.float32)

    ref = _reference(x, w1, b1, w2, b2, scale, heads)

    out = res_group_adapter(x, w1, b1, w2, b2, scale, heads=heads)
    out = jax.block_until_ready(out)

    assert out.shape == x.shape and out.dtype == x.dtype
    assert jnp.allclose(out, ref, atol=1e-4, rtol=1e-4), "mismatch vs pure-JAX reference"
    print("KERNEL_OK")
</pallas_src>

<mosaic_0001>
module attributes {stable_mosaic.version = 11 : i64} {
  func.func @res_group_adapter_kernel(%arg0: i32, %arg1: memref<1x32x256xf32, #tpu.memory_space<vmem>>, %arg2: memref<64x32xf32, #tpu.memory_space<vmem>>, %arg3: memref<64x1xf32, #tpu.memory_space<vmem>>, %arg4: memref<32x64xf32, #tpu.memory_space<vmem>>, %arg5: memref<32x1xf32, #tpu.memory_space<vmem>>, %arg6: memref<1x32x256xf32, #tpu.memory_space<vmem>>) attributes {dimension_semantics = [#tpu.dimension_semantics<parallel>], iteration_bounds = array<i64: 2>, scalar_prefetch = 0 : i64, scratch_operands = 0 : i64, tpu.core_type = #tpu.core_type<tc>, window_params = [{transform_indices = @transform_0, window_bounds = array<i64: 1, 32, 256>}, {pipeline_mode = #tpu.pipeline_mode<synchronous>, transform_indices = @transform_1, window_bounds = array<i64: 64, 32>}, {pipeline_mode = #tpu.pipeline_mode<synchronous>, transform_indices = @transform_2, window_bounds = array<i64: 64, 1>}, {pipeline_mode = #tpu.pipeline_mode<synchronous>, transform_indices = @transform_3, window_bounds = array<i64: 32, 64>}, {pipeline_mode = #tpu.pipeline_mode<synchronous>, transform_indices = @transform_4, window_bounds = array<i64: 32, 1>}, {transform_indices = @transform_5, window_bounds = array<i64: 1, 32, 256>}]} {
    %c0 = arith.constant 0 : index
    %c0_0 = arith.constant 0 : index
    %0 = vector.load %arg2[%c0, %c0_0] : memref<64x32xf32, #tpu.memory_space<vmem>>, vector<64x32xf32>
    %c0_1 = arith.constant 0 : index
    %c0_2 = arith.constant 0 : index
    %1 = vector.load %arg3[%c0_1, %c0_2] : memref<64x1xf32, #tpu.memory_space<vmem>>, vector<64x1xf32>
    %c0_3 = arith.constant 0 : index
    %c0_4 = arith.constant 0 : index
    %2 = vector.load %arg4[%c0_3, %c0_4] : memref<32x64xf32, #tpu.memory_space<vmem>>, vector<32x64xf32>
    %c0_5 = arith.constant 0 : index
    %c0_6 = arith.constant 0 : index
    %3 = vector.load %arg5[%c0_5, %c0_6] : memref<32x1xf32, #tpu.memory_space<vmem>>, vector<32x1xf32>
    %c0_7 = arith.constant 0 : index
    %c0_8 = arith.constant 0 : index
    %c0_9 = arith.constant 0 : index
    %4 = vector.load %arg1[%c0_7, %c0_8, %c0_9] : memref<1x32x256xf32, #tpu.memory_space<vmem>>, vector<1x32x256xf32>
    %5 = vector.shape_cast %4 : vector<1x32x256xf32> to vector<32x256xf32>
    %cst = arith.constant dense<0.000000e+00> : vector<64x256xf32>
    %6 = tpu.matmul %0, %5, %cst {dimension_numbers = #tpu.dot_dimension_numbers<[1], [0], [0], [1], [0, 0, 1, 1], [], []>} : vector<64x32xf32>, vector<32x256xf32>, vector<64x256xf32> -> vector<64x256xf32>
    %7 = vector.broadcast %1 : vector<64x1xf32> to vector<64x256xf32>
    %8 = arith.addf %6, %7 : vector<64x256xf32>
    %cst_10 = arith.constant 5.000000e-01 : f32
    %9 = vector.broadcast %cst_10 : f32 to vector<64x256xf32>
    %10 = arith.mulf %9, %8 : vector<64x256xf32>
    %cst_11 = arith.constant 0.707106769 : f32
    %11 = vector.broadcast %cst_11 : f32 to vector<64x256xf32>
    %12 = arith.mulf %8, %11 : vector<64x256xf32>
    %13 = math.erf %12 : vector<64x256xf32>
    %cst_12 = arith.constant 1.000000e+00 : f32
    %14 = vector.broadcast %cst_12 : f32 to vector<64x256xf32>
    %15 = arith.addf %14, %13 : vector<64x256xf32>
    %16 = arith.mulf %10, %15 : vector<64x256xf32>
    %cst_13 = arith.constant dense<0.000000e+00> : vector<32x256xf32>
    %17 = tpu.matmul %2, %16, %cst_13 {dimension_numbers = #tpu.dot_dimension_numbers<[1], [0], [0], [1], [0, 0, 1, 1], [], []>} : vector<32x64xf32>, vector<64x256xf32>, vector<32x256xf32> -> vector<32x256xf32>
    %18 = vector.broadcast %3 : vector<32x1xf32> to vector<32x256xf32>
    %19 = arith.addf %17, %18 : vector<32x256xf32>
    %20 = arith.addf %5, %19 : vector<32x256xf32>
    %c0_14 = arith.constant 0 : index
    %c0_15 = arith.constant 0 : index
    %c0_16 = arith.constant 0 : index
    %21 = vector.load %arg6[%c0_14, %c0_15, %c0_16] : memref<1x32x256xf32, #tpu.memory_space<vmem>>, vector<1x32x256xf32>
    %22 = vector.shape_cast %21 : vector<1x32x256xf32> to vector<32x256xf32>
    %23 = vector.shape_cast %20 : vector<32x256xf32> to vector<1x32x256xf32>
    tpu.vector_store %arg6[%c0_14, %c0_15, %c0_16], %23 {strides = array<i32>} : memref<1x32x256xf32, #tpu.memory_space<vmem>>, vector<1x32x256xf32>,
    return
  }
  func.func @transform_0(%arg0: i32) -> (i32, i32, i32) {
    %c0_i32 = arith.constant 0 : i32
    %c0_i32_0 = arith.constant 0 : i32
    %c0_i32_1 = arith.constant 0 : i32
    return %arg0, %c0_i32, %c0_i32_0 : i32, i32, i32
  }
  func.func @transform_1(%arg0: i32) -> (i32, i32) {
    %c0_i32 = arith.constant 0 : i32
    %c0_i32_0 = arith.constant 0 : i32
    %c0_i32_1 = arith.constant 0 : i32
    return %c0_i32, %c0_i32_0 : i32, i32
  }
  func.func @transform_2(%arg0: i32) -> (i32, i32) {
    %c0_i32 = arith.constant 0 : i32
    %c0_i32_0 = arith.constant 0 : i32
    %c0_i32_1 = arith.constant 0 : i32
    return %c0_i32, %c0_i32_0 : i32, i32
  }
  func.func @transform_3(%arg0: i32) -> (i32, i32) {
    %c0_i32 = arith.constant 0 : i32
    %c0_i32_0 = arith.constant 0 : i32
    %c0_i32_1 = arith.constant 0 : i32
    return %c0_i32, %c0_i32_0 : i32, i32
  }
  func.func @transform_4(%arg0: i32) -> (i32, i32) {
    %c0_i32 = arith.constant 0 : i32
    %c0_i32_0 = arith.constant 0 : i32
    %c0_i32_1 = arith.constant 0 : i32
    return %c0_i32, %c0_i32_0 : i32, i32
  }
  func.func @transform_5(%arg0: i32) -> (i32, i32, i32) {
    %c0_i32 = arith.constant 0 : i32
    %c0_i32_0 = arith.constant 0 : i32
    %c0_i32_1 = arith.constant 0 : i32
    return %arg0, %c0_i32, %c0_i32_0 : i32, i32, i32
  }
}

</mosaic_0001>

<bundles_post_ra>
// kernel: tpu_custom_call.1
= control target key start
LH: loop header
LB: loop body
LE: loop exit
PB: predicated region body
PF: predicated region fallthrough
CT: control target
= control target key end

     0   :  { %10 = vsyncpa [#allocation3], 0  ;;  %s2452_s0 = inlined_call_operand.hbm [shape: f32[2,32,256], index: 0, kind: input, shape index: {}, may-alias: {0,5}]   ;;  %s2453_s1 = inlined_call_operand.vmem [shape: f32[64,32], index: 1, kind: input, shape index: {}]   ;;  %s2454_s2 = inlined_call_operand.vmem [shape: f32[64,1], index: 2, kind: input, shape index: {}]   ;;  %s2455_s3 = inlined_call_operand.vmem [shape: f32[32,64], index: 3, kind: input, shape index: {}]   ;;  %s2456_s4 = inlined_call_operand.vmem [shape: f32[32,1], index: 4, kind: input, shape index: {}]   ;;  %s2457_s5 = inlined_call_operand.hbm [shape: f32[2,32,256], index: 5, kind: output, shape index: {}, may-alias: {0,5}]  }
   0x1   :  { %12 = vsyncpa [#allocation3 + $0x1], 0 }
   0x2   :  { %13 = vsyncpa [#allocation4], 0 }
   0x3   :  { %15 = vsyncpa [#allocation4 + $0x1], 0  ;;  %s1607_s18 = smov 0   ;;  %s1609_s19 = smov 0  }
   0x4   :  { %s1611_s20 = smov 0   ;;  %s1613_s21 = smov 0  }
   0x5 LB: > { %s1628_s22 = sadd.s32 4294967295, %s1570_s21   ;;  %s1324_s23 = sadd.s32 4294967294, %s1570_s21   ;;  %s1570_s21 = sphi %s1613_s21, %s2531_s21   ;;  %s1566_s20 = sphi %s1611_s20, %s2530_s20   ;;  %s1562_s19 = sphi %s1609_s19, %s2529_s19   ;;  %s1558_s18 = sphi %s1607_s18, %s2528_s18  }
   0x6   : > { %s1632_s24 = sadd.s32 1, %s1570_s21   ;;  %s28_s25 = sadd.s32 1, %s1566_s20 }
   0x7   : > { %s25_s26 = ssub.s32 %s1570_s21, %s1632_s24  ;;  %p35_p0 = scmp.ne.s32.totalorder %s1566_s20, %s1562_s19 }
   0x8   : > { %p26_p1 = scmp.eq.s32.totalorder %s25_s26, 0  ;;  %p36_p2 = scmp.eq.s32.totalorder %s1570_s21, 0 }
   0x9   : > { %p41_p3 = scmp.ne.s32.totalorder %s1562_s19, %s1558_s18  ;;  %p42_p4 = scmp.eq.s32.totalorder %s1628_s22, 0 }
   0xa   : > { %s1644_s27 = scalar_select %p26_p1, %s1566_s20, %s28_s25  }
   0xb   : > { %p1646_p5 = por %p36_p2, %p35_p0  ;;  %p1650_p6 = por %p42_p4, %p41_p3 }
   0xc   : > { %p149_p7 = scmp.eq.s32.totalorder %s1628_s22, 1  ;;  %p155_p8 = scmp.eq.s32.totalorder %s1324_s23, 1 }
   0xd   : > { %p1392_p10 = scmp.lt.s32.totalorder %s1570_s21, 2  ;;  %s187_s7 = sand.u32 1, %s1566_s20  }
   0xe   : > { %p1657_p11 = por %p149_p7, %p35_p0  ;;  %p1661_p12 = por %p155_p8, %p41_p3 }
   0xf   : > { %s1378_s8 = sshll.u32 %s1570_s21, 6  ;;  %s1327_s9 = sshll.u32 %s187_s7, 6 }
  0x10   : > { %s196_s12 = scalar_lea.hbm %s2452_s0, %s1378_s8  ;;  %s191_s14 = scalar_lea.vmem [#allocation2], %s1327_s9 }
  0x11   : > { %s197_s13 = sshll.u32 %s196_s12, 4  ;;  %s199_s15 = sshll.u32 %s191_s14, 4  ;;  %s198_s13 = int_to_ptr.hbm [resolvable:$true] %s197_s13  ;;  %s200_s15 = int_to_ptr.vmem [resolvable:$true] %s199_s15 }
  0x12   : > { %p1672_p13 = pnand %p1392_p10, %p1646_p5  ;;  %p1330_p0 = scmp.ge.s32.totalorder %s1570_s21, 1 }
  0x13   : > { %p207_p1 = scmp.lt.s32.totalorder %s1570_s21, 3  ;;  %s188_s17 = scalar_lea.sflag [#allocation3], %s187_s7 }
  0x14   : > { %s1474_s23 = sshra.s32 %s198_s13, 4  ;;  %p1478_p3 = pneg %p1672_p13  ;;  %s1475_s23 = int_to_ptr.hbm [resolvable:$true] %s1474_s23 }
  0x15   : > { %s1476_s25 = scalar_lea.hbm %s1475_s23, 64  ;;  %s1481_s28 = scalar_lea.hbm %s2452_s0, 128 }
  0x16   : > { %p1477_p2 = scmp.ne.s32.totalorder %s1475_s23, %s1476_s25  ;;  %p1482_p5 = scmp.lt.s32.totalorder %s1475_s23, %s2452_s0 }
  0x17   : > { %p1483_p8 = scmp.lt.s32.totalorder %s1481_s28, %s1476_s25 }
  0x18   : > { %p1479_p4 = pnand %p1478_p3, %p1477_p2 }
  0x19   : > { %p1484_p10 = por %p1483_p8, %p1482_p5 }
  0x1a   : > { %p1480_p7 = pneg %p1479_p4 }
  0x1c   : > { %p1485_p9 = pnand %p1484_p10, %p1480_p7 }
  0x1e   : > { %1488 = shalt.err (!%p1485_p9)
}
  0x1f   : > { %s1572_s7 = smov 256   ;;  %s1573_s11 = smov 16  }
  0x20   : > { %1387 = dma.hbm_to_vmem [thread:$0]  (!%p1672_p13), %s198_s13, 1024, %s200_s15, %s188_s17, %s1572_s7, %s1572_s7, %s1573_s11  }
  0x21   : > { %p208_p2 = pnand %p1330_p0, %p207_p1 }
  0x23   : > { %211 = sbr.rel (%p208_p2) target bundleno = 550 (0x226), region = 40 }
  0x28   : > { %s1693_s12 = sand.u32 1, %s1562_s19  }
  0x29   : > { %s1331_s14 = sshll.u32 %s1693_s12, 6  ;;  %s214_s23 = scalar_lea.sflag [#allocation3], %s1693_s12 }
  0x2a   : > { %s1699_s25 = scalar_lea.vmem [#allocation2], %s1331_s14 }
  0x2b   : > { %1549 = dma.done.wait (%p1650_p6), %s214_s23, 1024  }
  0x2c   : > { %1551 = vsyncadd (%p1650_p6), %s214_s23, 4294966272  ;;  %v1574_v0 = vmov 0   ;;  %v275_v1 = vld [vmem:[%s1699_s25 + $0x30] sm:$0xff]  ;;  %v276_v2 = vld [vmem:[%s1699_s25 + $0x38] sm:$0xff]  ;;  %vm317_vm0 = vcmask 261120   ;;  %s2401_s10 = scalar_lea.vmem [#allocation5], %s1331_s14 }
  0x2d   : > { %1432 = vset.pattern.permute.xlu1 %v1574_v0  ;;  %1431 = vset.pattern.permute.xlu0 %v1574_v0  ;;  %v273_v3 = vld [vmem:[%s1699_s25 + $0x20] sm:$0xff]  ;;  %v274_v4 = vld [vmem:[%s1699_s25 + $0x28] sm:$0xff]  ;;  %v271_v6 = vld [vmem:[%s1699_s25 + $0x10] sm:$0xff]  ;;  %s1379_s14 = sshll.u32 %s1628_s22, 6  ;;  %s1248_s29 = sshll.u32 %s2401_s10, 4  ;;  %s1249_s29 = int_to_ptr.vmem [resolvable:$true] %s1248_s29 }
  0x2e   : > { %1433 = vset.pattern.permute.xlu2 %v1574_v0  ;;  %354 = vmatpush.msra.mxu0 %v275_v1  ;;  %v258_v5 = vld [vmem:[%s2454_s2 + $0x28] sm:$0xff]  ;;  %v272_v7 = vld [vmem:[%s1699_s25 + $0x18] sm:$0xff]  ;;  %v269_v9 = vld [vmem:[%s1699_s25] sm:$0xff]  ;;  %s1247_s23 = scalar_lea.hbm %s2457_s5, %s1379_s14  ;;  %s1236_s13 = scalar_lea.sflag [#allocation4], %s1693_s12 }
  0x2f   : > { %395 = vmatpush.msra.mxu1 %v276_v2  ;;  %304 = vperm.xlu1 %1432, %v258_v5   ;;  %v260_v8 = vld [vmem:[%s2454_s2 + $0x38] sm:$0xff]  ;;  %v270_v10 = vld [vmem:[%s1699_s25 + $0x8] sm:$0xff]  ;;  %v245_v11 = vld [vmem:[%s2453_s1] sm:$0xff]  ;;  %s1250_s22 = sshll.u32 %s1247_s23, 4  ;;  %s1524_s8 = scalar_lea.hbm %s2457_s5, 128  ;;  %s1251_s22 = int_to_ptr.hbm [resolvable:$true] %s1250_s22 }
  0x30   : > { %355 = vmatpush.msra.mxu0 %v273_v3  ;;  %314 = vperm.xlu0 %1431, %v260_v8   ;;  %v257_v12 = vld [vmem:[%s2454_s2 + $0x20] sm:$0xff]  ;;  %v259_v13 = vld [vmem:[%s2454_s2 + $0x30] sm:$0xff]  ;;  %v246_v14 = vld [vmem:[%s2453_s1 + $0x8] sm:$0xff]  ;;  %s1518_s15 = sshra.s32 %s1251_s22, 4  ;;  %s1519_s15 = int_to_ptr.hbm [resolvable:$true] %s1518_s15 }
  0x31   : > { %396 = vmatpush.msra.mxu1 %v274_v4  ;;  %v253_v15 = vld [vmem:[%s2454_s2] sm:$0xff]  ;;  %v256_v16 = vld [vmem:[%s2454_s2 + $0x18] sm:$0xff]  ;;  %v254_v17 = vld [vmem:[%s2454_s2 + $0x8] sm:$0xff]  ;;  %s1520_s16 = scalar_lea.hbm %s1519_s15, 64  ;;  %p1525_p0 = scmp.lt.s32.totalorder %s1519_s15, %s2457_s5 }
  0x32   : > { %356 = vmatpush.msra.mxu0 %v271_v6  ;;  %294 = vperm.xlu2 %1433, %v256_v16   ;;  %v247_v18 = vld [vmem:[%s2453_s1 + $0x10] sm:$0xff]  ;;  %v248_v20 = vld [vmem:[%s2453_s1 + $0x18] sm:$0xff]  ;;  %v266_v21 = vld [vmem:[%s2456_s4 + $0x8] sm:$0xff]  ;;  %p1521_p6 = scmp.ne.s32.totalorder %s1519_s15, %s1520_s16  ;;  %p1526_p1 = scmp.lt.s32.totalorder %s1524_s8, %s1520_s16 }
  0x33   : > { %397 = vmatpush.msra.mxu1 %v272_v7  ;;  %v255_v19 = vld [vmem:[%s2454_s2 + $0x10] sm:$0xff]  ;;  %v265_v23 = vld [vmem:[%s2456_s4] sm:$0xff]  ;;  %v268_v25 = vld [vmem:[%s2456_s4 + $0x18] sm:$0xff] }
  0x34   : > { %357 = vmatpush.msra.mxu0 %v269_v9  ;;  %v267_v22 = vld [vmem:[%s2456_s4 + $0x10] sm:$0xff]  ;;  %v249_v24 = vld [vmem:[%s2453_s1 + $0x20] sm:$0xff]  ;;  %v250_v26 = vld [vmem:[%s2453_s1 + $0x28] sm:$0xff]  ;;  %p1522_p9 = pnand %p1521_p6, %p1657_p11  ;;  %p1527_p3 = por %p1526_p1, %p1525_p0 }
  0x35   : > { %398 = vmatpush.msra.mxu1 %v270_v10  ;;  %1333 = vmatmul.msk.f32.vlgmr.msra.gmra.mxu0 %vm317_vm0, %v245_v11  ;;  %v251_v27 = vld [vmem:[%s2453_s1 + $0x30] sm:$0xff]  ;;  %v252_v28 = vld [vmem:[%s2453_s1 + $0x38] sm:$0xff] }
  0x36   : > { %1341 = vmatmul.msk.f32.vlgmr.msra.gmra.mxu1 %vm317_vm0, %v245_v11  ;;  %p1523_p13 = pneg %p1522_p9 }
  0x37   : > { %299 = vperm.xlu1 %1432, %v257_v12  }
  0x38   : > { %309 = vperm.xlu0 %1431, %v259_v13   ;;  %p1528_p4 = pnand %p1527_p3, %p1523_p13 }
  0x3a   : > { %289 = vperm.xlu2 %1433, %v255_v19  }
  0x3d   : > { %1334 = vmatmul.msk.f32.gmra.mxu0 %vm317_vm0, %v246_v14 }
  0x3e   : > { %1342 = vmatmul.msk.f32.gmra.mxu1 %vm317_vm0, %v246_v14 }
  0x3f   : > { %279 = vperm.xlu1 %1432, %v253_v15  }
  0x40   : > { %284 = vperm.xlu0 %1431, %v254_v17  }
  0x42   : > { %1130 = vperm.xlu2 %1433, %v265_v23  }
  0x45   : > { %1335 = vmatmul.msk.f32.gmra.mxu0 %vm317_vm0, %v247_v18 }
  0x46   : > { %1343 = vmatmul.msk.f32.gmra.mxu1 %vm317_vm0, %v247_v18 }
  0x47   : > { %1140 = vperm.xlu1 %1432, %v267_v22  }
  0x48   : > { %1135 = vperm.xlu0 %1431, %v266_v21  }
  0x4a   : > { %1145 = vperm.xlu2 %1433, %v268_v25  }
  0x4d   : > { %1336 = vmatmul.msk.f32.gmra.mxu0 %vm317_vm0, %v248_v20 }
  0x4e   : > { %1344 = vmatmul.msk.f32.gmra.mxu1 %vm317_vm0, %v248_v20 }
  0x55   : > { %1337 = vmatmul.msk.f32.gmra.mxu0 %vm317_vm0, %v249_v24 }
  0x56   : > { %1345 = vmatmul.msk.f32.gmra.mxu1 %vm317_vm0, %v249_v24 }
  0x5d   : > { %1338 = vmatmul.msk.f32.gmra.mxu0 %vm317_vm0, %v250_v26 }
  0x5e   : > { %1346 = vmatmul.msk.f32.gmra.mxu1 %vm317_vm0, %v250_v26 }
  0x65   : > { %1339 = vmatmul.msk.f32.gmra.mxu0 %vm317_vm0, %v251_v27 }
  0x66   : > { %1347 = vmatmul.msk.f32.gmra.mxu1 %vm317_vm0, %v251_v27 }
  0x6d   : > { %1340 = vmatmul.msk.f32.gmra.mxu0 %vm317_vm0, %v252_v28 }
  0x6e   : > { %1348 = vmatmul.msk.f32.gmra.mxu1 %vm317_vm0, %v252_v28 }
  0x8c   : > { %v295_v35 = vpop.permute.xlu2 %294 }
  0x94   : > { %v290_v45 = vpop.permute.xlu2 %289 }
  0xa1   : > { %v1791_v30 = vpop.permute.xlu1 %304 }
  0xa2   : > { %v1789_v29 = vpop.permute.xlu0 %314 }
  0xa9   : > { %v1795_v32 = vpop.permute.xlu1 %299 }
  0xaa   : > { %v1793_v31 = vpop.permute.xlu0 %309 }
  0xb1   : > { %v280_v39 = vpop.permute.xlu1 %279 }
  0xb2   : > { %v359_v33 = vpop.f32.mrf.mxu0  ;;  %v285_v36 = vpop.permute.xlu0 %284 }
  0xb3   : > { %v400_v34 = vpop.f32.mrf.mxu1  ;;  %v1799_v41 = vadd.f32 %v359_v33, %v280_v39 }
  0xb4   : > { %v1804_v43 = vadd.f32 %v400_v34, %v280_v39 }
  0xb5   : > { %2474 = vst [vmem:[#allocation9_spill] sm:$0xff] %v1799_v41  ;;  %v1809_v46 = vmul.f32 0.70710677, %v1799_v41 }
  0xb6   : > { %2476 = vst [vmem:[#allocation11_spill] sm:$0xff] %v1804_v43  ;;  %v1818_v52 = vmul.f32 0.70710677, %v1804_v43 }
  0xb7   : > { %2478 = vst [vmem:[#allocation13_spill] sm:$0xff] %v1809_v46  ;;  %v456_v54 = vmul.f32 %v1809_v46, %v1809_v46 }
  0xb8   : > { %2480 = vst [vmem:[#allocation15_spill] sm:$0xff] %v1818_v52  ;;  %v496_v58 = vmul.f32 %v1818_v52, %v1818_v52 }
  0xb9   : > { %v1841_v62 = vmin.f32 %v456_v54, 16.0 }
  0xba   : > { %v362_v37 = vpop.f32.mrf.mxu0  ;;  %v1848_v4 = vmin.f32 %v496_v58, 16.0 }
  0xbb   : > { %v403_v38 = vpop.f32.mrf.mxu1  ;;  %v1797_v40 = vadd.f32 %v362_v37, %v285_v36  ;;  %v458_v10 = vmul.f32 2.1237322e-06, %v1841_v62 }
  0xbc   : > { %v1806_v44 = vadd.f32 %v403_v38, %v285_v36  ;;  %v498_v14 = vmul.f32 2.1237322e-06, %v1848_v4 }
  0xbd   : > { %2473 = vst [vmem:[#allocation8_spill] sm:$0xff] %v1797_v40  ;;  %v1802_v42 = vmul.f32 0.70710677, %v1797_v40  ;;  %v459_v20 = vadd.f32 0.00028619796, %v458_v10 }
  0xbe   : > { %2477 = vst [vmem:[#allocation12_spill] sm:$0xff] %v1806_v44  ;;  %v1821_v53 = vmul.f32 0.70710677, %v1806_v44  ;;  %v499_v33 = vadd.f32 0.00028619796, %v498_v14 }
  0xbf   : > { %2475 = vst [vmem:[#allocation10_spill] sm:$0xff] %v1802_v42  ;;  %v536_v47 = vmul.f32 %v1802_v42, %v1802_v42  ;;  %v460_v38 = vmul.f32 %v459_v20, %v1841_v62 }
  0xc0   : > { %2481 = vst [vmem:[#allocation16_spill] sm:$0xff] %v1821_v53  ;;  %v576_v59 = vmul.f32 %v1821_v53, %v1821_v53 }
  0xc1   : > { %v1825_v55 = vmin.f32 %v536_v47, 16.0 }
  0xc2   : > { %v365_v48 = vpop.f32.mrf.mxu0  ;;  %v1850_v5 = vmin.f32 %v576_v59, 16.0  ;;  %v500_v59 = vmul.f32 %v499_v33, %v1848_v4 }
  0xc3   : > { %v406_v49 = vpop.f32.mrf.mxu1  ;;  %v1813_v50 = vadd.f32 %v365_v48, %v290_v45  ;;  %v538_v63 = vmul.f32 2.1237322e-06, %v1825_v55 }
  0xc4   : > { %v1815_v51 = vadd.f32 %v406_v49, %v290_v45  ;;  %v578_v15 = vmul.f32 2.1237322e-06, %v1850_v5 }
  0xc5   : > { %v1828_v56 = vmul.f32 0.70710677, %v1813_v50  ;;  %v539_v11 = vadd.f32 0.00028619796, %v538_v63 }
  0xc6   : > { %2479 = vst [vmem:[#allocation14_spill] sm:$0xff] %v1815_v51  ;;  %v1831_v57 = vmul.f32 0.70710677, %v1815_v51  ;;  %v579_v34 = vadd.f32 0.00028619796, %v578_v15 }
  0xc7   : > { %v616_v60 = vmul.f32 %v1828_v56, %v1828_v56  ;;  %v540_v21 = vmul.f32 %v539_v11, %v1825_v55  ;;  %v501_v15 = vadd.f32 0.0036580483, %v500_v59 }
  0xc8   : > { %2482 = vst [vmem:[#allocation17_spill] sm:$0xff] %v1831_v57  ;;  %v656_v61 = vmul.f32 %v1831_v57, %v1831_v57 }
  0xc9   : > { %v1844_v0 = vmin.f32 %v616_v60, 16.0  ;;  %v541_v39 = vadd.f32 0.0036580483, %v540_v21  ;;  %v580_v60 = vmul.f32 %v579_v34, %v1850_v5 }
  0xca   : > { %v368_v1 = vpop.f32.mrf.mxu0  ;;  %v1846_v3 = vmin.f32 %v656_v61, 16.0 }
  0xcb   : > { %v409_v2 = vpop.f32.mrf.mxu1  ;;  %v618_v6 = vmul.f32 2.1237322e-06, %v1844_v0  ;;  %v1853_v7 = vadd.f32 %v368_v1, %v295_v35 }
  0xcc   : > { %v658_v8 = vmul.f32 2.1237322e-06, %v1846_v3  ;;  %v1856_v9 = vadd.f32 %v409_v2, %v295_v35  ;;  %v461_v2 = vadd.f32 0.0036580483, %v460_v38 }
  0xcd   : > { %v619_v12 = vadd.f32 0.00028619796, %v618_v6  ;;  %v1863_v17 = vmul.f32 0.70710677, %v1853_v7 }
  0xce   : > { %v659_v13 = vadd.f32 0.00028619796, %v658_v8  ;;  %v1867_v19 = vmul.f32 0.70710677, %v1856_v9  ;;  %v1916_v33 = vmul.f32 %v461_v2, %v1841_v62 }
  0xcf   : > { %v620_v16 = vmul.f32 %v619_v12, %v1844_v0  ;;  %v696_v23 = vmul.f32 %v1863_v17, %v1863_v17 }
  0xd0   : > { %v660_v18 = vmul.f32 %v659_v13, %v1846_v3  ;;  %v736_v27 = vmul.f32 %v1867_v19, %v1867_v19  ;;  %2483 = vst [vmem:[#allocation18_spill] sm:$0xff] %v1916_v33 }
  0xd1   : > { %v621_v22 = vadd.f32 0.0036580483, %v620_v16  ;;  %v1877_v35 = vmin.f32 %v696_v23, 16.0  ;;  %v581_v16 = vadd.f32 0.0036580483, %v580_v60 }
  0xd2   : > { %v371_v24 = vpop.f32.mrf.mxu0  ;;  %v661_v26 = vadd.f32 0.0036580483, %v660_v18  ;;  %v1879_v36 = vmin.f32 %v736_v27, 16.0 }
  0xd3   : > { %v412_v25 = vpop.f32.mrf.mxu1  ;;  %v1875_v28 = vadd.f32 %v371_v24, %v1795_v32  ;;  %v622_v45 = vmul.f32 %v621_v22, %v1844_v0  ;;  %v698_v49 = vmul.f32 2.1237322e-06, %v1877_v35 }
  0xd4   : > { %v1887_v47 = vadd.f32 %v412_v25, %v1795_v32  ;;  %v662_v48 = vmul.f32 %v661_v26, %v1846_v3  ;;  %v738_v54 = vmul.f32 2.1237322e-06, %v1879_v36  ;;  %v542_v32 = vmul.f32 %v541_v39, %v1825_v55 }
  0xd5   : > { %v1882_v37 = vmul.f32 0.70710677, %v1875_v28  ;;  %v699_v61 = vadd.f32 0.00028619796, %v698_v49  ;;  %v623_v11 = vadd.f32 0.05243302, %v622_v45  ;;  %v1922_v45 = vmul.f32 %v501_v15, %v1848_v4 }
  0xd6   : > { %v739_v63 = vadd.f32 0.00028619796, %v738_v54  ;;  %v1900_v6 = vmul.f32 0.70710677, %v1887_v47  ;;  %v663_v12 = vadd.f32 0.05243302, %v662_v48  ;;  %v582_v48 = vmul.f32 %v581_v16, %v1850_v5 }
  0xd7   : > { %v776_v58 = vmul.f32 %v1882_v37, %v1882_v37  ;;  %v700_v13 = vmul.f32 %v699_v61, %v1877_v35  ;;  %v543_v24 = vadd.f32 0.05243302, %v542_v32  ;;  %v624_v34 = vmul.f32 %v623_v11, %v1844_v0  ;;  %2484 = vst [vmem:[#allocation19_spill] sm:$0xff] %v1922_v45 }
  0xd8   : > { %v816_v18 = vmul.f32 %v1900_v6, %v1900_v6  ;;  %v740_v22 = vmul.f32 %v739_v63, %v1879_v36  ;;  %v664_v38 = vmul.f32 %v663_v12, %v1846_v3  ;;  %v1929_v54 = vmul.f32 0.5, %v1813_v50 }
  0xd9   : > { %v1896_v1 = vmin.f32 %v776_v58, 16.0  ;;  %v701_v21 = vadd.f32 0.0036580483, %v700_v13  ;;  %v544_v61 = vmul.f32 %v543_v24, %v1825_v55  ;;  %v625_v11 = vadd.f32 0.18741608, %v624_v34 }
  0xda   : > { %v374_v8 = vpop.f32.mrf.mxu0  ;;  %v1908_v25 = vmin.f32 %v816_v18, 16.0  ;;  %2485 = vst [vmem:[#allocation20_spill] sm:$0xff] %v1929_v54  ;;  %v741_v59 = vadd.f32 0.0036580483, %v740_v22  ;;  %v665_v12 = vadd.f32 0.18741608, %v664_v38 }
  0xdb   : > { %v415_v10 = vpop.f32.mrf.mxu1  ;;  %v778_v14 = vmul.f32 2.1237322e-06, %v1896_v1  ;;  %v375_v20 = vadd.f32 %v374_v8, %v1791_v30  ;;  %v702_v58 = vmul.f32 %v701_v21, %v1877_v35  ;;  %v1945_v21 = vmul.f32 0.5, %v1853_v7 }
  0xdc   : > { %v1913_v27 = vadd.f32 %v415_v10, %v1791_v30  ;;  %v818_v49 = vmul.f32 2.1237322e-06, %v1908_v25  ;;  %v1949_v34 = vmul.f32 0.5, %v1856_v9 }
  0xdd   : > { %v779_v23 = vadd.f32 0.00028619796, %v778_v14  ;;  %v1910_v26 = vmul.f32 0.70710677, %v375_v20  ;;  %v583_v14 = vadd.f32 0.05243302, %v582_v48 }
  0xde   : > { %v819_v63 = vadd.f32 0.00028619796, %v818_v49  ;;  %v1936_v32 = vmul.f32 0.70710677, %v1913_v27  ;;  %v703_v22 = vadd.f32 0.05243302, %v702_v58 }
  0xdf   : > { %v780_v39 = vmul.f32 %v779_v23, %v1896_v1  ;;  %v856_v30 = vmul.f32 %v1910_v26, %v1910_v26  ;;  %v742_v23 = vmul.f32 %v741_v59, %v1879_v36  ;;  %2486 = vst [vmem:[#allocation21_spill] sm:$0xff] %v1949_v34  ;;  %v1953_v49 = vadd.f32 0.18741608, %v544_v61 }
  0xe0   : > { %v820_v15 = vmul.f32 %v819_v63, %v1908_v25  ;;  %v896_v18 = vmul.f32 %v1936_v32, %v1936_v32  ;;  %v1967_v61 = vmul.f32 0.5, %v1887_v47 }
  0xe1   : > { %v781_v60 = vadd.f32 0.0036580483, %v780_v39  ;;  %v1933_v2 = vmin.f32 %v856_v30, 16.0  ;;  %2487 = vst [vmem:[#allocation22_spill] sm:$0xff] %v1953_v49  ;;  %v626_v30 = vmul.f32 %v625_v11, %v1844_v0 }
  0xe2   : > { %v377_v8 = vpop.f32.mrf.mxu0  ;;  %v821_v38 = vadd.f32 0.0036580483, %v820_v15  ;;  %v1951_v48 = vmin.f32 %v896_v18, 16.0 }
  0xe3   : > { %v418_v10 = vpop.f32.mrf.mxu1  ;;  %v782_v13 = vmul.f32 %v781_v60, %v1896_v1  ;;  %v378_v50 = vadd.f32 %v377_v8, %v1793_v31  ;;  %v858_v16 = vmul.f32 2.1237322e-06, %v1933_v2  ;;  %v666_v60 = vmul.f32 %v665_v12, %v1846_v3 }
  0xe4   : > { %v898_v59 = vmul.f32 2.1237322e-06, %v1951_v48  ;;  %v419_v9 = vadd.f32 %v418_v10, %v1793_v31  ;;  %v743_v8 = vadd.f32 0.05243302, %v742_v23  ;;  %v704_v12 = vmul.f32 %v703_v22, %v1877_v35 }
  0xe5   : > { %v783_v24 = vadd.f32 0.05243302, %v782_v13  ;;  %v859_v39 = vadd.f32 0.00028619796, %v858_v16  ;;  %v1957_v63 = vmul.f32 0.70710677, %v378_v50  ;;  %v822_v15 = vmul.f32 %v821_v38, %v1908_v25 }
  0xe6   : > { %v1964_v13 = vmul.f32 0.5, %v1875_v28  ;;  %v899_v18 = vadd.f32 0.00028619796, %v898_v59  ;;  %v627_v43 = vadd.f32 1.1283791, %v626_v30  ;;  %v1975_v10 = vmul.f32 0.5, %v375_v20 }
  0xe7   : > { %v784_v7 = vmul.f32 %v783_v24, %v1896_v1  ;;  %v860_v58 = vmul.f32 %v859_v39, %v1933_v2  ;;  %v936_v11 = vmul.f32 %v1957_v63, %v1957_v63  ;;  %v1973_v31 = vadd.f32 1.1283791, %v666_v60 }
  0xe8   : > { %v900_v41 = vmul.f32 %v899_v18, %v1951_v48  ;;  %v1981_v52 = vmul.f32 0.70710677, %v419_v9  ;;  %v744_v22 = vmul.f32 %v743_v8, %v1879_v36  ;;  %v705_v20 = vadd.f32 0.18741608, %v704_v12 }
  0xe9   : > { %v861_v16 = vadd.f32 0.0036580483, %v860_v58  ;;  %2488 = vst [vmem:[#allocation23_spill] sm:$0xff] %v1973_v31  ;;  %v1977_v28 = vmin.f32 %v936_v11, 16.0  ;;  %v785_v47 = vadd.f32 0.18741608, %v784_v7  ;;  %v1992_v11 = vmul.f32 %v583_v14, %v1850_v5 }
  0xea   : > { %v380_v24 = vpop.f32.mrf.mxu0  ;;  %v823_v60 = vadd.f32 0.05243302, %v822_v15  ;;  %v901_v59 = vadd.f32 0.0036580483, %v900_v41  ;;  %v976_v7 = vmul.f32 %v1981_v52, %v1981_v52  ;;  %v2004_v41 = vmul.f32 %v627_v43, %v1828_v56 }
  0xeb   : > { %v421_v39 = vpop.f32.mrf.mxu1  ;;  %v862_v23 = vmul.f32 %v861_v16, %v1933_v2  ;;  %v938_v38 = vmul.f32 2.1237322e-06, %v1977_v28  ;;  %v381_v58 = vadd.f32 %v380_v24, %v1789_v29  ;;  %2489 = vst [vmem:[#allocation24_spill] sm:$0xff] %v1992_v11  ;;  %v786_v24 = vmul.f32 %v785_v47, %v1896_v1 }
  0xec   : > { %v1987_v30 = vadd.f32 %v421_v39, %v1789_v29  ;;  %v902_v29 = vmul.f32 %v901_v59, %v1951_v48  ;;  %v2001_v12 = vmin.f32 %v976_v7, 16.0  ;;  %2490 = vst [vmem:[#allocation25_spill] sm:$0xff] %v2004_v41  ;;  %v824_v44 = vmul.f32 %v823_v60, %v1908_v25 }
  0xed   : > { %v939_v16 = vadd.f32 0.00028619796, %v938_v38  ;;  %v1994_v18 = vmul.f32 0.70710677, %v381_v58  ;;  %v863_v46 = vadd.f32 0.05243302, %v862_v23 }
  0xee   : > { %v1997_v8 = vmul.f32 0.70710677, %v1987_v30  ;;  %v745_v38 = vadd.f32 0.18741608, %v744_v22  ;;  %v2013_v47 = vmul.f32 0.5, %v1913_v27  ;;  %v2015_v23 = vmul.f32 0.5, %v378_v50 }
  0xef   : > { %v940_v15 = vmul.f32 %v939_v16, %v1977_v28  ;;  %v1016_v14 = vmul.f32 %v1994_v18, %v1994_v18  ;;  %v978_v43 = vmul.f32 2.1237322e-06, %v2001_v12  ;;  %v2023_v16 = vmul.f32 %v705_v20, %v1877_v35 }
  0xf0   : > { %v1056_v39 = vmul.f32 %v1997_v8, %v1997_v8  ;;  %v787_v53 = vadd.f32 1.1283791, %v786_v24  ;;  %v864_v22 = vmul.f32 %v863_v46, %v1933_v2  ;;  %v903_v40 = vadd.f32 0.05243302, %v902_v29 }
  0xf1   : > { %v941_v59 = vadd.f32 0.0036580483, %v940_v15  ;;  %v2018_v56 = vmin.f32 %v1016_v14, 16.0  ;;  %v979_v27 = vadd.f32 0.00028619796, %v978_v43  ;;  %v2030_v42 = vmul.f32 %v745_v38, %v1879_v36 }
  0xf2   : > { %v2020_v7 = vmin.f32 %v1056_v39, 16.0  ;;  %v2032_v14 = vadd.f32 0.18741608, %v824_v44  ;;  %v2034_v39 = vmul.f32 0.5, %v419_v9  ;;  %v865_v43 = vadd.f32 0.18741608, %v864_v22 }
  0xf3   : > { %v942_v60 = vmul.f32 %v941_v59, %v1977_v28  ;;  %v1018_v50 = vmul.f32 2.1237322e-06, %v2018_v56  ;;  %v1029_v20 = vmul.f32 3.8918573e-05, %v2018_v56  ;;  %v980_v46 = vmul.f32 %v979_v27, %v2001_v12 }
  0xf4   : > { %v1058_v15 = vmul.f32 2.1237322e-06, %v2020_v7  ;;  %v2039_v59 = vmul.f32 %v787_v53, %v1882_v37  ;;  %v1069_v11 = vmul.f32 3.8918573e-05, %v2020_v7  ;;  %v904_v38 = vmul.f32 %v903_v40, %v1951_v48 }
  0xf5   : > { %v943_v24 = vadd.f32 0.05243302, %v942_v60  ;;  %v1019_v29 = vadd.f32 0.00028619796, %v1018_v50  ;;  %v1030_v54 = vadd.f32 0.001143296, %v1029_v20  ;;  %v866_v40 = vmul.f32 %v865_v43, %v1933_v2 }
  0xf6   : > { %v1059_v51 = vadd.f32 0.00028619796, %v1058_v15  ;;  %v981_v44 = vadd.f32 0.0036580483, %v980_v46  ;;  %v2045_v33 = vmul.f32 0.5, %v381_v58 }
  0xf7   : > { %v1020_v9 = vmul.f32 %v1019_v29, %v2018_v56  ;;  %v1031_v60 = vmul.f32 %v1030_v54, %v2018_v56  ;;  %v1070_v27 = vadd.f32 0.001143296, %v1069_v11  ;;  %v949_v50 = vmul.f32 3.8918573e-05, %v1977_v28 }
  0xf8   : > { %v1060_v45 = vmul.f32 %v1059_v51, %v2020_v7  ;;  %v944_v53 = vmul.f32 %v943_v24, %v1977_v28  ;;  %v982_v37 = vmul.f32 %v981_v44, %v2001_v12  ;;  %v905_v51 = vadd.f32 0.18741608, %v904_v38 }
  0xf9   : > { %v1021_v22 = vadd.f32 0.0036580483, %v1020_v9  ;;  %v1032_v20 = vadd.f32 0.014752088, %v1031_v60  ;;  %v1071_v46 = vmul.f32 %v1070_v27, %v2020_v7  ;;  %v950_v29 = vadd.f32 0.001143296, %v949_v50 }
  0xfa   : > { %v1061_v15 = vadd.f32 0.0036580483, %v1060_v45  ;;  %v983_v58 = vadd.f32 0.05243302, %v982_v37  ;;  %v989_v44 = vmul.f32 3.8918573e-05, %v2001_v12 }
  0xfb   : > { %v1022_v31 = vmul.f32 %v1021_v22, %v2018_v56  ;;  %v1033_v11 = vmul.f32 %v1032_v20, %v2018_v56  ;;  %v1072_v57 = vadd.f32 0.014752088, %v1071_v46  ;;  %v951_v24 = vmul.f32 %v950_v29, %v1977_v28 }
  0xfc   : > { %v1062_v54 = vmul.f32 %v1061_v15, %v2020_v7  ;;  %v945_v45 = vadd.f32 0.18741608, %v944_v53  ;;  %v984_v43 = vmul.f32 %v983_v58, %v2001_v12  ;;  %v990_v37 = vadd.f32 0.001143296, %v989_v44 }
  0xfd   : > { %v1023_v9 = vadd.f32 0.05243302, %v1022_v31  ;;  %v1034_v27 = vadd.f32 0.112945676, %v1033_v11  ;;  %v1073_v38 = vmul.f32 %v1072_v57, %v2020_v7  ;;  %v952_v50 = vadd.f32 0.014752088, %v951_v24 }
  0xfe   : > { %v1063_v60 = vadd.f32 0.05243302, %v1062_v54  ;;  %v906_v22 = vmul.f32 %v905_v51, %v1951_v48  ;;  %v985_v15 = vadd.f32 0.18741608, %v984_v43  ;;  %v991_v31 = vmul.f32 %v990_v37, %v2001_v12 }
  0xff   : > { %v1024_v20 = vmul.f32 %v1023_v9, %v2018_v56  ;;  %v1035_v29 = vmul.f32 %v1034_v27, %v2018_v56  ;;  %v1074_v49 = vadd.f32 0.112945676, %v1073_v38  ;;  %v953_v53 = vmul.f32 %v952_v50, %v1977_v28 }
 0x100   : > { %v1064_v46 = vmul.f32 %v1063_v60, %v2020_v7  ;;  %v946_v58 = vmul.f32 %v945_v45, %v1977_v28  ;;  %v869_v11 = vmul.f32 3.8918573e-05, %v1933_v2  ;;  %v992_v43 = vadd.f32 0.014752088, %v991_v31 }
 0x101   : > { %v1025_v54 = vadd.f32 0.18741608, %v1024_v20  ;;  %v1036_v24 = vadd.f32 0.4994258, %v1035_v29  ;;  %v1075_v51 = vmul.f32 %v1074_v49, %v2020_v7  ;;  %v954_v44 = vadd.f32 0.112945676, %v953_v53 }
 0x102   : > { %v1065_v57 = vadd.f32 0.18741608, %v1064_v46  ;;  %v986_v9 = vmul.f32 %v985_v15, %v2001_v12  ;;  %v870_v38 = vadd.f32 0.001143296, %v869_v11  ;;  %v993_v20 = vmul.f32 %v992_v43, %v2001_v12 }
 0x103   : > { %v1026_v60 = vmul.f32 %v1025_v54, %v2018_v56  ;;  %v1037_v50 = vmul.f32 %v1036_v24, %v2018_v56  ;;  %v1076_v37 = vadd.f32 0.4994258, %v1075_v51  ;;  %v955_v45 = vmul.f32 %v954_v44, %v1977_v28 }
 0x104   : > { %v1066_v27 = vmul.f32 %v1065_v57, %v2020_v7  ;;  %v867_v46 = vadd.f32 1.1283791, %v866_v40  ;;  %v907_v29 = vadd.f32 1.1283791, %v906_v22  ;;  %v2076_v49 = vmul.f32 0.5, %v1987_v30 }
 0x105   : > { %v871_v53 = vmul.f32 %v870_v38, %v1933_v2  ;;  %v2079_v15 = vadd.f32 1.0, %v1037_v50  ;;  %v1077_v31 = vmul.f32 %v1076_v37, %v2020_v7  ;;  %v956_v54 = vadd.f32 0.4994258, %v955_v45 }
 0x106   : > { %v994_v57 = vadd.f32 0.112945676, %v993_v20  ;;  %v2084_v56 = vmul.f32 %v2032_v14, %v1908_v25  ;;  %v947_v11 = vadd.f32 1.1283791, %v946_v58  ;;  %v909_v40 = vmul.f32 3.8918573e-05, %v1951_v48 }
 0x107   : > { %v872_v24 = vadd.f32 0.014752088, %v871_v53  ;;  %v987_v22 = vadd.f32 1.1283791, %v986_v9  ;;  %v1027_v51 = vadd.f32 1.1283791, %v1026_v60  ;;  %1434 = vrcp.f32 %v2079_v15 }
 0x108   : > { %v1067_v30 = vadd.f32 1.1283791, %v1066_v27  ;;  %v2088_v44 = vadd.f32 1.0, %v1077_v31  ;;  %v957_v43 = vmul.f32 %v956_v54, %v1977_v28  ;;  %v995_v7 = vmul.f32 %v994_v57, %v2001_v12 }
 0x109   : > { %v873_v38 = vmul.f32 %v872_v24, %v1933_v2  ;;  %v2094_v14 = vmul.f32 %v867_v46, %v1910_v26  ;;  %v2097_v58 = vmul.f32 %v907_v29, %v1936_v32  ;;  %v910_v50 = vadd.f32 0.001143296, %v909_v40 }
 0x10a   : > { %v789_v9 = vmul.f32 3.8918573e-05, %v1896_v1  ;;  %v2101_v60 = vmul.f32 %v947_v11, %v1957_v63  ;;  %v1048_v27 = vand.u32 2147483647, %v2079_v15  ;;  %v1050_v28 = vand.u32 2147483648, %v2079_v15 }
 0x10b   : > { %1436 = vrcp.f32 %v2088_v44  ;;  %v2106_v37 = vadd.f32 1.0, %v957_v43  ;;  %v996_v45 = vadd.f32 0.4994258, %v995_v7  ;;  %v874_v26 = vadd.f32 0.112945676, %v873_v38 }
 0x10c   : > { %v911_v20 = vmul.f32 %v910_v50, %v1951_v48  ;;  %v2110_v32 = vmul.f32 %v987_v22, %v1981_v52  ;;  %v1028_v46 = vmul.f32 %v1027_v51, %v1994_v18  ;;  %v2114_v63 = vmul.f32 %v1067_v30, %v1997_v8 }
 0x10d   : > { %v790_v29 = vadd.f32 0.001143296, %v789_v9  ;;  %v1435_v53 = vpop.eup %1434  ;;  %vm1044_vm1 = vweird.f32 %v2079_v15  ;;  %v1088_v31 = vand.u32 2147483647, %v2088_v44  ;;  %v1090_v54 = vand.u32 2147483648, %v2088_v44 }
 0x10e   : > { %1438 = vrcp.f32 %v2106_v37  ;;  %v1040_v57 = vmul.f32 %v1435_v53, %v2079_v15  ;;  %vm2121_vm2 = vcmp.eq.f32.partialorder %v1048_v27, 8.507059e+37  ;;  %v1051_v18 = vor.u32 1.1754944e-38, %v1050_v28 }
 0x10f   : > { %v997_v8 = vmul.f32 %v996_v45, %v2001_v12  ;;  %v875_v11 = vmul.f32 %v874_v26, %v1933_v2  ;;  %vm1084_vm3 = vweird.f32 %v2088_v44  ;;  %v968_v24 = vand.u32 2147483647, %v2106_v37 }
 0x110   : > { %v912_v40 = vadd.f32 0.014752088, %v911_v20  ;;  %v829_v22 = vmul.f32 3.8918573e-05, %v1908_v25  ;;  %v1041_v30 = vsub.f32 1.0, %v1040_v57  ;;  %v791_v38 = vmul.f32 %v790_v29, %v1896_v1 }
 0x111   : > { %v1437_v51 = vpop.eup %1436  ;;  %v2130_v43 = vadd.f32 1.0, %v997_v8  ;;  %v876_v7 = vadd.f32 0.4994258, %v875_v11  ;;  %vm2134_vm4 = vcmp.eq.f32.partialorder %v1088_v31, 8.507059e+37  ;;  %v1091_v9 = vor.u32 1.1754944e-38, %v1090_v54 }
 0x112   : > { %v1080_v50 = vmul.f32 %v1437_v51, %v2088_v44  ;;  %v913_v27 = vmul.f32 %v912_v40, %v1951_v48  ;;  %v1042_v28 = vmul.f32 %v1435_v53, %v1041_v30  ;;  %vm1045_vm5 = vweird.f32 %v1435_v53 }
 0x113   : > { %vm964_vm6 = vweird.f32 %v2106_v37  ;;  %v970_v45 = vand.u32 2147483648, %v2106_v37  ;;  %1440 = vrcp.f32 %v2130_v43  ;;  %v877_v29 = vmul.f32 %v876_v7, %v1933_v2  ;;  %vm1046_vm9 = vmor %vm1044_vm1, %vm1045_vm5 }
 0x114   : > { %v1439_v26 = vpop.eup %1438  ;;  %v1081_v20 = vsub.f32 1.0, %v1080_v50  ;;  %v914_v57 = vadd.f32 0.112945676, %v913_v27  ;;  %v830_v31 = vadd.f32 0.001143296, %v829_v22  ;;  %v1043_v8 = vadd.f32 %v1435_v53, %v1042_v28 }
 0x115   : > { %vm1085_vm7 = vweird.f32 %v1437_v51  ;;  %v960_v54 = vmul.f32 %v1439_v26, %v2106_v37  ;;  %vm2144_vm8 = vcmp.eq.f32.partialorder %v968_v24, 8.507059e+37  ;;  %v792_v40 = vadd.f32 0.014752088, %v791_v38 }
 0x116   : > { %v1082_v30 = vmul.f32 %v1437_v51, %v1081_v20  ;;  %v1008_v41 = vand.u32 2147483647, %v2130_v43  ;;  %v2151_v50 = vadd.f32 1.0, %v877_v29  ;;  %v915_v2 = vmul.f32 %v914_v57, %v1951_v48  ;;  %vm1086_vm12 = vmor %vm1084_vm3, %vm1085_vm7 }
 0x117   : > { %v1047_v22 = vsel %vm1046_vm9, %v1435_v53, %v1043_v8  ;;  %v961_v7 = vsub.f32 1.0, %v960_v54  ;;  %v971_v27 = vor.u32 1.1754944e-38, %v970_v45  ;;  %v1010_v28 = vand.u32 2147483648, %v2130_v43 }
 0x118   : > { %v1052_v24 = vsel %vm2121_vm2, %v1051_v18, %v1047_v22  ;;  %v1083_v34 = vadd.f32 %v1437_v51, %v1082_v30  ;;  %vm965_vm10 = vweird.f32 %v1439_v26  ;;  %vm1004_vm11 = vweird.f32 %v2130_v43 }
 0x119   : > { %1442 = vrcp.f32 %v2151_v50  ;;  %v1441_v15 = vpop.eup %1440  ;;  %v1053_v38 = vmul.f32 %v1052_v24, %v1028_v46  ;;  %v962_v53 = vmul.f32 %v1439_v26, %v961_v7  ;;  %v793_v45 = vmul.f32 %v792_v40, %v1896_v1  ;;  %vm966_vm14 = vmor %vm964_vm6, %vm965_vm10 }
 0x11a   : > { %v831_v20 = vmul.f32 %v830_v31, %v1908_v25  ;;  %v1087_v29 = vsel %vm1086_vm12, %v1437_v51, %v1083_v34  ;;  %v1000_v52 = vmul.f32 %v1441_v15, %v2130_v43  ;;  %vm2165_vm13 = vcmp.eq.f32.partialorder %v1008_v41, 8.507059e+37 }
 0x11b   : > { %v888_v57 = vand.u32 2147483647, %v2151_v50  ;;  %v916_v8 = vadd.f32 0.4994258, %v915_v2  ;;  %v1363_v46 = vclamps-f32 %v1053_v38, 1.0  ;;  %v1092_v44 = vsel %vm2134_vm4, %v1091_v9, %v1087_v29 }
 0x11c   : > { %v963_v54 = vadd.f32 %v1439_v26, %v962_v53  ;;  %v890_v30 = vand.u32 2147483648, %v2151_v50  ;;  %v1093_v40 = vmul.f32 %v1092_v44, %v2114_v63  ;;  %v1001_v34 = vsub.f32 1.0, %v1000_v52 }
 0x11d   : > { %vm1005_vm15 = vweird.f32 %v1441_v15  ;;  %v917_v41 = vmul.f32 %v916_v8, %v1951_v48  ;;  %v1110_v51 = vadd.f32 1.0, %v1363_v46  ;;  %v794_v2 = vadd.f32 0.112945676, %v793_v45 }
 0x11e   : > { %v967_v31 = vsel %vm966_vm14, %v1439_v26, %v963_v54  ;;  %v832_v22 = vadd.f32 0.014752088, %v831_v20  ;;  %v1364_v12 = vclamps-f32 %v1093_v40, 1.0  ;;  %v1002_v24 = vmul.f32 %v1441_v15, %v1001_v34  ;;  %vm1006_vm1 = vmor %vm1004_vm11, %vm1005_vm15 }
 0x11f   : > { %v1443_v7 = vpop.eup %1442  ;;  %v972_v9 = vsel %vm2144_vm8, %v971_v27, %v967_v31  ;;  %v2180_v38 = vadd.f32 1.0, %v917_v41  ;;  %v1126_v63 = vmul.f32 %v1110_v51, %v2045_v33  ;;  %v1011_v53 = vor.u32 1.1754944e-38, %v1010_v28 }
 0x120   : > { %v973_v37 = vmul.f32 %v972_v9, %v2101_v60  ;;  %v880_v29 = vmul.f32 %v1443_v7, %v2151_v50  ;;  %v1111_v48 = vadd.f32 1.0, %v1364_v12  ;;  %v1003_v52 = vadd.f32 %v1441_v15, %v1002_v24 }
 0x121   : > { %vm884_vm0 = vweird.f32 %v2151_v50  ;;  %1444 = vrcp.f32 %v2180_v38  ;;  %1169 = vmatpush.msra.mxu2 %v1126_v63  ;;  %vm2190_vm2 = vcmp.eq.f32.partialorder %v888_v57, 8.507059e+37  ;;  %v891_v60 = vor.u32 1.1754944e-38, %v890_v30 }
 0x122   : > { %v1361_v26 = vclamps-f32 %v973_v37, 1.0  ;;  %v881_v11 = vsub.f32 1.0, %v880_v29  ;;  %v1127_v27 = vmul.f32 %v1111_v48, %v2076_v49  ;;  %v1007_v28 = vsel %vm1006_vm1, %v1441_v15, %v1003_v52 }
 0x123   : > { %v795_v45 = vmul.f32 %v794_v2, %v1896_v1  ;;  %v833_v20 = vmul.f32 %v832_v22, %v1908_v25  ;;  %v1012_v46 = vsel %vm2165_vm13, %v1011_v53, %v1007_v28  ;;  %vm885_vm3 = vweird.f32 %v1443_v7 }
 0x124   : > { %v1108_v8 = vadd.f32 1.0, %v1361_v26  ;;  %v882_v44 = vmul.f32 %v1443_v7, %v881_v11  ;;  %1198 = vmatpush.msra.mxu3 %v1127_v27  ;;  %v1013_v43 = vmul.f32 %v1012_v46, %v2110_v32  ;;  %v928_v57 = vand.u32 2147483647, %v2180_v38  ;;  %vm886_vm4 = vmor %vm884_vm0, %vm885_vm3 }
 0x125   : > { %v796_v54 = vadd.f32 0.4994258, %v795_v45  ;;  %v834_v30 = vadd.f32 0.112945676, %v833_v20  ;;  %v709_v40 = vmul.f32 3.8918573e-05, %v1877_v35  ;;  %vm924_vm5 = vweird.f32 %v2180_v38 }
 0x126   : > { %v1124_v49 = vmul.f32 %v1108_v8, %v2015_v23  ;;  %v883_v15 = vadd.f32 %v1443_v7, %v882_v44  ;;  %v749_v34 = vmul.f32 3.8918573e-05, %v1879_v36  ;;  %v1362_v51 = vclamps-f32 %v1013_v43, 1.0 }
 0x127   : > { %v1445_v41 = vpop.eup %1444  ;;  %v930_v18 = vand.u32 2147483648, %v2180_v38  ;;  %v797_v32 = vmul.f32 %v796_v54, %v1896_v1  ;;  %v835_v31 = vmul.f32 %v834_v30, %v1908_v25  ;;  %v710_v22 = vadd.f32 0.001143296, %v709_v40 }
 0x128   : > { %1170 = vmatpush.msra.mxu2 %v1124_v49  ;;  %v887_v2 = vsel %vm886_vm4, %v1443_v7, %v883_v15  ;;  %v920_v23 = vmul.f32 %v1445_v41, %v2180_v38  ;;  %v629_v12 = vmul.f32 3.8918573e-05, %v1844_v0  ;;  %v1109_v9 = vadd.f32 1.0, %v1362_v51 }
 0x129   : > { %v892_v24 = vsel %vm2190_vm2, %v891_v60, %v887_v2  ;;  %v2213_v63 = vadd.f32 1.0, %v797_v32  ;;  %v836_v50 = vadd.f32 0.4994258, %v835_v31  ;;  %v711_v1 = vmul.f32 %v710_v22, %v1877_v35 }
 0x12a   : > { %v893_v37 = vmul.f32 %v892_v24, %v2094_v14  ;;  %v921_v53 = vsub.f32 1.0, %v920_v23  ;;  %v750_v29 = vadd.f32 0.001143296, %v749_v34  ;;  %v1125_v7 = vmul.f32 %v1109_v9, %v2034_v39 }
 0x12b   : > { %vm2219_vm6 = vcmp.eq.f32.partialorder %v928_v57, 8.507059e+37  ;;  %1446 = vrcp.f32 %v2213_v63  ;;  %vm925_vm7 = vweird.f32 %v1445_v41  ;;  %v837_v11 = vmul.f32 %v836_v50, %v1908_v25 }
 0x12c   : > { %v1359_v52 = vclamps-f32 %v893_v37, 1.0  ;;  %v922_v26 = vmul.f32 %v1445_v41, %v921_v53  ;;  %1199 = vmatpush.msra.mxu3 %v1125_v7  ;;  %v931_v14 = vor.u32 1.1754944e-38, %v930_v18  ;;  %v712_v33 = vadd.f32 0.014752088, %v711_v1  ;;  %vm926_vm8 = vmor %vm924_vm5, %vm925_vm7 }
 0x12d   : > { %v751_v60 = vmul.f32 %v750_v29, %v1879_v36  ;;  %v630_v27 = vadd.f32 0.001143296, %v629_v12  ;;  %v808_v45 = vand.u32 2147483647, %v2213_v63  ;;  %v2227_v20 = vadd.f32 1.0, %v837_v11 }
 0x12e   : > { %v1106_v39 = vadd.f32 1.0, %v1359_v52  ;;  %v923_v28 = vadd.f32 %v1445_v41, %v922_v26  ;;  %v810_v8 = vand.u32 2147483648, %v2213_v63  ;;  %v713_v46 = vmul.f32 %v712_v33, %v1877_v35 }
 0x12f   : > { %v752_v25 = vadd.f32 0.014752088, %v751_v60  ;;  %v631_v44 = vmul.f32 %v630_v27, %v1844_v0  ;;  %1448 = vrcp.f32 %v2227_v20  ;;  %v669_v54 = vmul.f32 3.8918573e-05, %v1846_v3 }
 0x130   : > { %v1122_v43 = vmul.f32 %v1106_v39, %v1975_v10  ;;  %v927_v57 = vsel %vm926_vm8, %v1445_v41, %v923_v28  ;;  %v827_v49 = vadd.f32 1.1283791, %v2084_v56  ;;  %vm804_vm9 = vweird.f32 %v2213_v63 }
 0x131   : > { %v1447_v30 = vpop.eup %1446  ;;  %v932_v38 = vsel %vm2219_vm6, %v931_v14, %v927_v57  ;;  %v714_v15 = vadd.f32 0.112945676, %v713_v46  ;;  %vm2243_vm10 = vcmp.eq.f32.partialorder %v808_v45, 8.507059e+37  ;;  %v753_v41 = vmul.f32 %v752_v25, %v1879_v36 }
 0x132   : > { %1171 = vmatpush.msra.mxu2 %v1122_v43  ;;  %v933_v40 = vmul.f32 %v932_v38, %v2097_v58  ;;  %v800_v34 = vmul.f32 %v1447_v30, %v2213_v63  ;;  %v811_v51 = vor.u32 1.1754944e-38, %v810_v8  ;;  %v848_v56 = vand.u32 2147483647, %v2227_v20 }
 0x133   : > { %v715_v18 = vmul.f32 %v714_v15, %v1877_v35  ;;  %v632_v32 = vadd.f32 0.014752088, %v631_v44  ;;  %v754_v23 = vadd.f32 0.112945676, %v753_v41  ;;  %v670_v22 = vadd.f32 0.001143296, %v669_v54 }
 0x134   : > { %v1360_v31 = vclamps-f32 %v933_v40, 1.0  ;;  %v801_v2 = vsub.f32 1.0, %v800_v34  ;;  %vm805_vm11 = vweird.f32 %v1447_v30  ;;  %v549_v9 = vmul.f32 3.8918573e-05, %v1825_v55 }
 0x135   : > { %v716_v58 = vadd.f32 0.4994258, %v715_v18  ;;  %v633_v12 = vmul.f32 %v632_v32, %v1844_v0  ;;  %v1449_v24 = vpop.eup %1448  ;;  %v755_v53 = vmul.f32 %v754_v23, %v1879_v36  ;;  %v671_v1 = vmul.f32 %v670_v22, %v1846_v3  ;;  %vm806_vm12 = vmor %vm804_vm9, %vm805_vm11 }
 0x136   : > { %v1107_v50 = vadd.f32 1.0, %v1360_v31  ;;  %v802_v37 = vmul.f32 %v1447_v30, %v801_v2  ;;  %v840_v29 = vmul.f32 %v1449_v24, %v2227_v20  ;;  %v850_v7 = vand.u32 2147483648, %v2227_v20 }
 0x137   : > { %v717_v48 = vmul.f32 %v716_v58, %v1877_v35  ;;  %v634_v52 = vadd.f32 0.112945676, %v633_v12  ;;  %v756_v14 = vadd.f32 0.4994258, %v755_v53  ;;  %v672_v33 = vadd.f32 0.014752088, %v671_v1 }
 0x138   : > { %v1123_v26 = vmul.f32 %v1107_v50, %v2013_v47  ;;  %v803_v11 = vadd.f32 %v1447_v30, %v802_v37  ;;  %v841_v60 = vsub.f32 1.0, %v840_v29  ;;  %v550_v28 = vadd.f32 0.001143296, %v549_v9 }
 0x139   : > { %v2261_v27 = vadd.f32 1.0, %v717_v48  ;;  %v635_v39 = vmul.f32 %v634_v52, %v1844_v0  ;;  %v757_v35 = vmul.f32 %v756_v14, %v1879_v36  ;;  %v673_v8 = vmul.f32 %v672_v33, %v1846_v3 }
 0x13a   : > { %1200 = vmatpush.msra.mxu3 %v1123_v26  ;;  %v807_v45 = vsel %vm806_vm12, %v1447_v30, %v803_v11  ;;  %v589_v47 = vmul.f32 3.8918573e-05, %v1850_v5  ;;  %v842_v25 = vmul.f32 %v1449_v24, %v841_v60  ;;  %vm845_vm13 = vweird.f32 %v1449_v24 }
 0x13b   : > { %v812_v46 = vsel %vm2243_vm10, %v811_v51, %v807_v45  ;;  %1450 = vrcp.f32 %v2261_v27  ;;  %v707_v63 = vadd.f32 1.1283791, %v2023_v16  ;;  %vm844_vm14 = vweird.f32 %v2227_v20 }
 0x13c   : > { %v813_v44 = vmul.f32 %v812_v46, %v2039_v59  ;;  %v2273_v43 = vadd.f32 1.0, %v757_v35  ;;  %v843_v36 = vadd.f32 %v1449_v24, %v842_v25  ;;  %v636_v57 = vadd.f32 0.4994258, %v635_v39  ;;  %vm846_vm15 = vmor %vm844_vm14, %vm845_vm13 }
 0x13d   : > { %v674_v54 = vadd.f32 0.112945676, %v673_v8  ;;  %v551_v30 = vmul.f32 %v550_v28, %v1825_v55  ;;  %v747_v38 = vadd.f32 1.1283791, %v2030_v42  ;;  %v851_v40 = vor.u32 1.1754944e-38, %v850_v7 }
 0x13e   : > { %v1357_v15 = vclamps-f32 %v813_v44, 1.0  ;;  %1452 = vrcp.f32 %v2273_v43  ;;  %v828_v16 = vmul.f32 %v827_v49, %v1900_v6  ;;  %v847_v34 = vsel %vm846_vm15, %v1449_v24, %v843_v36 }
 0x13f   : > { %vm849_vm0 = vcmp.eq.f32.partialorder %v848_v56, 8.507059e+37  ;;  %v590_v59 = vadd.f32 0.001143296, %v589_v47  ;;  %v637_v41 = vmul.f32 %v636_v57, %v1844_v0  ;;  %v675_v51 = vmul.f32 %v674_v54, %v1846_v3 }
 0x140   : > { %v1104_v20 = vadd.f32 1.0, %v1357_v15  ;;  %v852_v10 = vsel %vm849_vm0, %v851_v40, %v847_v34  ;;  %v708_v32 = vmul.f32 %v707_v63, %v1863_v17  ;;  %v728_v31 = vand.u32 2147483647, %v2261_v27 }
 0x141   : > { %v1451_v18 = vpop.eup %1450  ;;  %v853_v42 = vmul.f32 %v852_v10, %v828_v16  ;;  %v552_v2 = vadd.f32 0.014752088, %v551_v30  ;;  %v748_v23 = vmul.f32 %v747_v38, %v1867_v19  ;;  %v2286_v56 = vadd.f32 1.0, %v637_v41 }
 0x142   : > { %v1120_v6 = vmul.f32 %v1104_v20, %v1964_v13  ;;  %v720_v49 = vmul.f32 %v1451_v18, %v2261_v27  ;;  %v676_v58 = vadd.f32 0.4994258, %v675_v51  ;;  %v591_v12 = vmul.f32 %v590_v59, %v1850_v5  ;;  %v2510_v13 = vld [vmem:[#allocation25_spill] sm:$0xff] }
 0x143   : > { %v1358_v22 = vclamps-f32 %v853_v42, 1.0  ;;  %v553_v0 = vmul.f32 %v552_v2, %v1825_v55  ;;  %vm724_vm1 = vweird.f32 %v2261_v27  ;;  %v730_v24 = vand.u32 2147483648, %v2261_v27 }
 0x144   : > { %v1453_v9 = vpop.eup %1452  ;;  %1172 = vmatpush.msra.mxu2 %v1120_v6  ;;  %v721_v17 = vsub.f32 1.0, %v720_v49  ;;  %1454 = vrcp.f32 %v2286_v56  ;;  %vm2293_vm2 = vcmp.eq.f32.partialorder %v728_v31, 8.507059e+37  ;;  %v768_v37 = vand.u32 2147483647, %v2273_v43 }
 0x145   : > { %v1105_v19 = vadd.f32 1.0, %v1358_v22  ;;  %v760_v50 = vmul.f32 %v1453_v9, %v2273_v43  ;;  %vm725_vm3 = vweird.f32 %v1451_v18  ;;  %v677_v1 = vmul.f32 %v676_v58, %v1846_v3 }
 0x146   : > { %v722_v53 = vmul.f32 %v1451_v18, %v721_v17  ;;  %v554_v29 = vadd.f32 0.112945676, %v553_v0  ;;  %v770_v52 = vand.u32 2147483648, %v2273_v43  ;;  %v592_v26 = vadd.f32 0.014752088, %v591_v12  ;;  %vm726_vm4 = vmor %vm724_vm1, %vm725_vm3 }
 0x147   : > { %v1121_v7 = vmul.f32 %v1105_v19, %v1967_v61  ;;  %v761_v48 = vsub.f32 1.0, %v760_v50  ;;  %v731_v14 = vor.u32 1.1754944e-38, %v730_v24  ;;  %v2302_v33 = vadd.f32 1.0, %v677_v1  ;;  %v2509_v24 = vld [vmem:[#allocation21_spill] sm:$0xff] }
 0x148   : > { %v723_v11 = vadd.f32 %v1451_v18, %v722_v53  ;;  %v555_v60 = vmul.f32 %v554_v29, %v1825_v55  ;;  %vm765_vm5 = vweird.f32 %v1453_v9  ;;  %v593_v3 = vmul.f32 %v592_v26, %v1850_v5 }
 0x149   : > { %1201 = vmatpush.msra.mxu3 %v1121_v7  ;;  %v762_v39 = vmul.f32 %v1453_v9, %v761_v48  ;;  %v469_v61 = vmul.f32 3.8918573e-05, %v1841_v62  ;;  %vm764_vm6 = vweird.f32 %v2273_v43  ;;  %vm2310_vm7 = vcmp.eq.f32.partialorder %v768_v37, 8.507059e+37  ;;  %v2511_v37 = vld [vmem:[#allocation22_spill] sm:$0xff]  ;;  %v2512_v48 = vld [vmem:[#allocation17_spill] sm:$0xff] }
 0x14a   : > { %v1455_v28 = vpop.eup %1454  ;;  %v727_v45 = vsel %vm726_vm4, %v1451_v18, %v723_v11  ;;  %1456 = vrcp.f32 %v2302_v33  ;;  %v771_v47 = vor.u32 1.1754944e-38, %v770_v52  ;;  %vm766_vm8 = vmor %vm764_vm6, %vm765_vm5  ;;  %v648_v63 = vand.u32 2147483647, %v2286_v56  ;;  %v2513_v52 = vld [vmem:[#allocation23_spill] sm:$0xff] }
 0x14b   : > { %v732_v27 = vsel %vm2293_vm2, %v731_v14, %v727_v45  ;;  %v763_v8 = vadd.f32 %v1453_v9, %v762_v39  ;;  %v640_v46 = vmul.f32 %v1455_v28, %v2286_v56  ;;  %v650_v44 = vand.u32 2147483648, %v2286_v56 }
 0x14c   : > { %v733_v25 = vmul.f32 %v732_v27, %v708_v32  ;;  %v556_v43 = vadd.f32 0.4994258, %v555_v60  ;;  %v594_v54 = vadd.f32 0.112945676, %v593_v3  ;;  %v470_v30 = vadd.f32 0.001143296, %v469_v61 }
 0x14d   : > { %v767_v36 = vsel %vm766_vm8, %v1453_v9, %v763_v8  ;;  %v641_v57 = vsub.f32 1.0, %v640_v46  ;;  %v509_v16 = vmul.f32 3.8918573e-05, %v1848_v4  ;;  %vm644_vm9 = vweird.f32 %v2286_v56  ;;  %v2514_v27 = vld [vmem:[#allocation18_spill] sm:$0xff] }
 0x14e   : > { %v1355_v38 = vclamps-f32 %v733_v25, 1.0  ;;  %v772_v15 = vsel %vm2310_vm7, %v771_v47, %v767_v36  ;;  %v557_v40 = vmul.f32 %v556_v43, %v1825_v55  ;;  %vm645_vm10 = vweird.f32 %v1455_v28  ;;  %v2515_v47 = vld [vmem:[#allocation19_spill] sm:$0xff] }
 0x14f   : > { %v773_v34 = vmul.f32 %v772_v15, %v748_v23  ;;  %v642_v59 = vmul.f32 %v1455_v28, %v641_v57  ;;  %v595_v51 = vmul.f32 %v594_v54, %v1850_v5  ;;  %v471_v18 = vmul.f32 %v470_v30, %v1841_v62  ;;  %vm646_vm12 = vmor %vm644_vm9, %vm645_vm10 }
 0x150   : > { %v1457_v20 = vpop.eup %1456  ;;  %v1102_v10 = vadd.f32 1.0, %v1355_v38  ;;  %v2325_v41 = vadd.f32 1.0, %v557_v40  ;;  %vm649_vm11 = vcmp.eq.f32.partialorder %v648_v63, 8.507059e+37  ;;  %v651_v23 = vor.u32 1.1754944e-38, %v650_v44  ;;  %v2517_v44 = vld [vmem:[#allocation20_spill] sm:$0xff] }
 0x151   : > { %v1356_v32 = vclamps-f32 %v773_v34, 1.0  ;;  %v643_v42 = vadd.f32 %v1455_v28, %v642_v59  ;;  %v680_v31 = vmul.f32 %v1457_v20, %v2302_v33  ;;  %v510_v6 = vadd.f32 0.001143296, %v509_v16  ;;  %v2518_v59 = vld [vmem:[#allocation14_spill] sm:$0xff] }
 0x152   : > { %v1118_v2 = vmul.f32 %v1102_v10, %v1945_v21  ;;  %1458 = vrcp.f32 %v2325_v41  ;;  %v688_v58 = vand.u32 2147483647, %v2302_v33  ;;  %v690_v12 = vand.u32 2147483648, %v2302_v33 }
 0x153   : > { %v1103_v49 = vadd.f32 1.0, %v1356_v32  ;;  %v647_v56 = vsel %vm646_vm12, %v1455_v28, %v643_v42  ;;  %v681_v22 = vsub.f32 1.0, %v680_v31  ;;  %v596_v9 = vadd.f32 0.4994258, %v595_v51 }
 0x154   : > { %1173 = vmatpush.msra.mxu2 %v1118_v2  ;;  %v652_v0 = vsel %vm649_vm11, %v651_v23, %v647_v56  ;;  %v472_v17 = vadd.f32 0.014752088, %v471_v18  ;;  %vm685_vm13 = vweird.f32 %v1457_v20  ;;  %v546_v53 = vmul.f32 %v2511_v37, %v1825_v55  ;;  %v2519_v2 = vld [vmem:[#allocation10_spill] sm:$0xff] }
 0x155   : > { %v1119_v19 = vmul.f32 %v1103_v49, %v2509_v24  ;;  %v653_v21 = vmul.f32 %v652_v0, %v2510_v13  ;;  %v682_v50 = vmul.f32 %v1457_v20, %v681_v22  ;;  %v597_v1 = vmul.f32 %v596_v9, %v1850_v5 }
 0x156   : > { %v473_v29 = vmul.f32 %v472_v17, %v1841_v62  ;;  %v511_v7 = vmul.f32 %v510_v6, %v1848_v4  ;;  %v668_v26 = vmul.f32 %v2513_v52, %v2512_v48  ;;  %vm684_vm14 = vweird.f32 %v2302_v33  ;;  %v2516_v33 = vld [vmem:[#allocation24_spill] sm:$0xff] }
 0x157   : > { %1202 = vmatpush.msra.mxu3 %v1119_v19  ;;  %v1353_v11 = vclamps-f32 %v653_v21, 1.0  ;;  %v683_v14 = vadd.f32 %v1457_v20, %v682_v50  ;;  %vm686_vm15 = vmor %vm684_vm14, %vm685_vm13  ;;  %v691_v39 = vor.u32 1.1754944e-38, %v690_v12  ;;  %v2344_v3 = vadd.f32 1.0, %v597_v1 }
 0x158   : > { %v1459_v60 = vpop.eup %1458  ;;  %v474_v55 = vadd.f32 0.112945676, %v473_v29  ;;  %v512_v61 = vadd.f32 0.014752088, %v511_v7  ;;  %vm689_vm0 = vcmp.eq.f32.partialorder %v688_v58, 8.507059e+37  ;;  %v570_v30 = vand.u32 2147483648, %v2325_v41 }
 0x159   : > { %v1100_v28 = vadd.f32 1.0, %v1353_v11  ;;  %v687_v45 = vsel %vm686_vm15, %v1457_v20, %v683_v14  ;;  %v560_v35 = vmul.f32 %v1459_v60, %v2325_v41  ;;  %v463_v8 = vadd.f32 0.05243302, %v2514_v27  ;;  %v2520_v7 = vld [vmem:[#allocation8_spill] sm:$0xff] }
 0x15a   : > { %v503_v46 = vadd.f32 0.05243302, %v2515_v47  ;;  %v692_v25 = vsel %vm689_vm0, %v691_v39, %v687_v45  ;;  %1460 = vrcp.f32 %v2344_v3  ;;  %v585_v63 = vadd.f32 0.18741608, %v2516_v33  ;;  %v2521_v14 = vld [vmem:[#allocation16_spill] sm:$0xff] }
 0x15b   : > { %v1116_v43 = vmul.f32 %v1100_v28, %v2517_v44  ;;  %v693_v36 = vmul.f32 %v692_v25, %v668_v26  ;;  %v561_v57 = vsub.f32 1.0, %v560_v35  ;;  %v547_v54 = vadd.f32 1.1283791, %v546_v53 }
 0x15c   : > { %v475_v38 = vmul.f32 %v474_v55, %v1841_v62  ;;  %v513_v15 = vmul.f32 %v512_v61, %v1848_v4  ;;  %vm565_vm1 = vweird.f32 %v1459_v60  ;;  %v568_v34 = vand.u32 2147483647, %v2325_v41 }
 0x15d   : > { %1174 = vmatpush.msra.mxu2 %v1116_v43  ;;  %v1354_v40 = vclamps-f32 %v693_v36, 1.0  ;;  %v562_v16 = vmul.f32 %v1459_v60, %v561_v57  ;;  %v429_v20 = vmul.f32 0.5, %v2518_v59  ;;  %v586_v18 = vmul.f32 %v585_v63, %v1850_v5  ;;  %v2522_v63 = vld [vmem:[#allocation12_spill] sm:$0xff]  ;;  %v2523_v59 = vld [vmem:[#allocation13_spill] sm:$0xff] }
 0x15e   : > { %v476_v10 = vadd.f32 0.4994258, %v475_v38  ;;  %v514_v51 = vadd.f32 0.112945676, %v513_v15  ;;  %vm564_vm2 = vweird.f32 %v2325_v41  ;;  %v548_v23 = vmul.f32 %v547_v54, %v2519_v2 }
 0x15f   : > { %v1101_v32 = vadd.f32 1.0, %v1354_v40  ;;  %v563_v42 = vadd.f32 %v1459_v60, %v562_v16  ;;  %vm566_vm3 = vmor %vm564_vm2, %vm565_vm1  ;;  %v571_v6 = vor.u32 1.1754944e-38, %v570_v30  ;;  %vm569_vm4 = vcmp.eq.f32.partialorder %v568_v34, 8.507059e+37 }
 0x160   : > { %v1461_v31 = vpop.eup %1460  ;;  %v477_v49 = vmul.f32 %v476_v10, %v1841_v62  ;;  %v515_v56 = vmul.f32 %v514_v51, %v1848_v4  ;;  %v464_v5 = vmul.f32 %v463_v8, %v1841_v62  ;;  %v587_v19 = vadd.f32 1.1283791, %v586_v18 }
 0x161   : > { %v1117_v22 = vmul.f32 %v1101_v32, %v429_v20  ;;  %v567_v58 = vsel %vm566_vm3, %v1459_v60, %v563_v42  ;;  %v600_v0 = vmul.f32 %v1461_v31, %v2344_v3  ;;  %v608_v13 = vand.u32 2147483647, %v2344_v3 }
 0x162   : > { %v572_v12 = vsel %vm569_vm4, %v571_v6, %v567_v58  ;;  %v478_v9 = vadd.f32 1.0, %v477_v49  ;;  %v516_v17 = vadd.f32 0.4994258, %v515_v56  ;;  %v610_v21 = vand.u32 2147483648, %v2344_v3  ;;  %v2524_v6 = vld [vmem:[#allocation15_spill] sm:$0xff] }
 0x163   : > { %1203 = vmatpush.msra.mxu3 %v1117_v22  ;;  %v573_v41 = vmul.f32 %v572_v12, %v548_v23  ;;  %v601_v24 = vsub.f32 1.0, %v600_v0  ;;  %vm605_vm5 = vweird.f32 %v1461_v31  ;;  %v465_v1 = vadd.f32 0.18741608, %v464_v5  ;;  %v2525_v22 = vld [vmem:[#allocation9_spill] sm:$0xff] }
 0x164   : > { %1462 = vrcp.f32 %v478_v9  ;;  %v517_v53 = vmul.f32 %v516_v17, %v1848_v4  ;;  %v504_v29 = vmul.f32 %v503_v46, %v1848_v4  ;;  %v426_v48 = vmul.f32 0.5, %v2520_v7  ;;  %v261_v17 = vld [vmem:[%s2455_s3] sm:$0xff] }
 0x165   : > { %v1351_v50 = vclamps-f32 %v573_v41, 1.0  ;;  %v602_v37 = vmul.f32 %v1461_v31, %v601_v24  ;;  %vm604_vm6 = vweird.f32 %v2344_v3  ;;  %v588_v60 = vmul.f32 %v587_v19, %v2521_v14  ;;  %v2526_v24 = vld [vmem:[#allocation11_spill] sm:$0xff]  ;;  %v1136_v14 = vpop.permute.xlu0 %1135 }
 0x166   : > { %v518_v11 = vadd.f32 1.0, %v517_v53  ;;  %vm606_vm7 = vmor %vm604_vm6, %vm605_vm5  ;;  %v611_v39 = vor.u32 1.1754944e-38, %v610_v21  ;;  %vm609_vm8 = vcmp.eq.f32.partialorder %v608_v13, 8.507059e+37  ;;  %v466_v45 = vmul.f32 %v465_v1, %v1841_v62  ;;  %v264_v53 = vld [vmem:[%s2455_s3 + $0x18] sm:$0xff]  ;;  %v1131_v1 = vpop.permute.xlu2 %1130 }
 0x167   : > { %v1098_v52 = vadd.f32 1.0, %v1351_v50  ;;  %v603_v26 = vadd.f32 %v1461_v31, %v602_v37  ;;  %v505_v35 = vadd.f32 0.18741608, %v504_v29  ;;  %v427_v44 = vmul.f32 0.5, %v2522_v63  ;;  %v262_v50 = vld [vmem:[%s2455_s3 + $0x8] sm:$0xff]  ;;  %v263_v37 = vld [vmem:[%s2455_s3 + $0x10] sm:$0xff] }
 0x168   : > { %1464 = vrcp.f32 %v518_v11  ;;  %v467_v3 = vadd.f32 1.1283791, %v466_v45  ;;  %v490_v43 = vand.u32 2147483648, %v478_v9  ;;  %v488_v30 = vand.u32 2147483647, %v478_v9 }
 0x169   : > { %v1114_v55 = vmul.f32 %v1098_v52, %v426_v48  ;;  %v607_v61 = vsel %vm606_vm7, %v1461_v31, %v603_v26  ;;  %v506_v33 = vmul.f32 %v505_v35, %v1848_v4  ;;  %vm484_vm10 = vweird.f32 %v478_v9  ;;  %v1466_v48 = vld [vmem:[%s1699_s25] sm:$0xff] }
 0x16a   : > { %v1463_v28 = vpop.eup %1462  ;;  %v612_v27 = vsel %vm609_vm8, %v611_v39, %v607_v61  ;;  %v491_v16 = vor.u32 1.1754944e-38, %v490_v43  ;;  %v468_v20 = vmul.f32 %v467_v3, %v2523_v59  ;;  %vm489_vm12 = vcmp.eq.f32.partialorder %v488_v30, 8.507059e+37 }
 0x16b   : > { %1175 = vmatpush.msra.mxu2 %v1114_v55  ;;  %v613_v8 = vmul.f32 %v612_v27, %v588_v60  ;;  %v480_v47 = vmul.f32 %v1463_v28, %v478_v9  ;;  %vm485_vm9 = vweird.f32 %v1463_v28  ;;  %v507_v40 = vadd.f32 1.1283791, %v506_v33  ;;  %v1467_v60 = vld [vmem:[%s1699_s25 + $0x8] sm:$0xff]  ;;  %v1470_v33 = vld [vmem:[%s1699_s25 + $0x20] sm:$0xff] }
 0x16c   : > { %vm486_vm11 = vmor %vm484_vm10, %vm485_vm9  ;;  %v530_v10 = vand.u32 2147483648, %v518_v11  ;;  %v528_v32 = vand.u32 2147483647, %v518_v11  ;;  %vm524_vm14 = vweird.f32 %v518_v11  ;;  %v424_v58 = vmul.f32 0.5, %v2525_v22 }
 0x16d   : > { %v1352_v46 = vclamps-f32 %v613_v8, 1.0  ;;  %v481_v25 = vsub.f32 1.0, %v480_v47  ;;  %v508_v49 = vmul.f32 %v507_v40, %v2524_v6  ;;  %vm1148_vm1 = vcmask 523264   ;;  %v1141_v8 = vpop.permute.xlu1 %1140  ;;  %v1469_v47 = vld [vmem:[%s1699_s25 + $0x18] sm:$0xff] }
 0x16e   : > { %v1465_v36 = vpop.eup %1464  ;;  %v531_v23 = vor.u32 1.1754944e-38, %v530_v10  ;;  %vm529_vm0 = vcmp.eq.f32.partialorder %v528_v32, 8.507059e+37  ;;  %v425_v19 = vmul.f32 0.5, %v2526_v24 }
 0x16f   : > { %v1099_v57 = vadd.f32 1.0, %v1352_v46  ;;  %v482_v54 = vmul.f32 %v1463_v28, %v481_v25  ;;  %v520_v38 = vmul.f32 %v1465_v36, %v518_v11  ;;  %vm525_vm13 = vweird.f32 %v1465_v36 }
 0x170   : > { %vm526_vm15 = vmor %vm524_vm14, %vm525_vm13 }
 0x171   : > { %v1115_v62 = vmul.f32 %v1099_v57, %v427_v44  ;;  %v483_v15 = vadd.f32 %v1463_v28, %v482_v54  ;;  %v521_v34 = vsub.f32 1.0, %v520_v38  ;;  %v1471_v57 = vld [vmem:[%s1699_s25 + $0x28] sm:$0xff] }
 0x173   : > { %1204 = vmatpush.msra.mxu3 %v1115_v62  ;;  %v487_v4 = vsel %vm486_vm11, %v1463_v28, %v483_v15  ;;  %v522_v18 = vmul.f32 %v1465_v36, %v521_v34  ;;  %v1468_v28 = vld [vmem:[%s1699_s25 + $0x10] sm:$0xff]  ;;  %v1473_v34 = vld [vmem:[%s1699_s25 + $0x38] sm:$0xff] }
 0x174   : > { %v492_v51 = vsel %vm489_vm12, %v491_v16, %v487_v4  ;;  %v1472_v62 = vld [vmem:[%s1699_s25 + $0x30] sm:$0xff] }
 0x175   : > { %v493_v42 = vmul.f32 %v492_v51, %v468_v20  ;;  %v523_v31 = vadd.f32 %v1465_v36, %v522_v18 }
 0x177   : > { %v1349_v2 = vclamps-f32 %v493_v42, 1.0  ;;  %v527_v56 = vsel %vm526_vm15, %v1465_v36, %v523_v31  ;;  %v1146_v36 = vpop.permute.xlu2 %1145 }
 0x178   : > { %v532_v5 = vsel %vm529_vm0, %v531_v23, %v527_v56 }
 0x179   : > { %v1096_v0 = vadd.f32 1.0, %v1349_v2  ;;  %v533_v12 = vmul.f32 %v532_v5, %v508_v49 }
 0x17b   : > { %v1112_v9 = vmul.f32 %v1096_v0, %v424_v58  ;;  %v1350_v41 = vclamps-f32 %v533_v12, 1.0 }
 0x17d   : > { %1176 = vmatpush.msra.mxu2 %v1112_v9  ;;  %v1097_v13 = vadd.f32 1.0, %v1350_v41 }
 0x17e   : > { %1365 = vmatmul.msk.f32.vlgmr.msra.gmra.mxu2 %vm1148_vm1, %v261_v17 }
 0x17f   : > { %v1113_v21 = vmul.f32 %v1097_v13, %v425_v19 }
 0x181   : > { %1205 = vmatpush.msra.mxu3 %v1113_v21 }
 0x182   : > { %1369 = vmatmul.msk.f32.vlgmr.msra.gmra.mxu3 %vm1148_vm1, %v261_v17 }
 0x186   : > { %1366 = vmatmul.msk.f32.gmra.mxu2 %vm1148_vm1, %v262_v50 }
 0x18a   : > { %1370 = vmatmul.msk.f32.gmra.mxu3 %vm1148_vm1, %v262_v50 }
 0x18e   : > { %1367 = vmatmul.msk.f32.gmra.mxu2 %vm1148_vm1, %v263_v37 }
 0x192   : > { %1371 = vmatmul.msk.f32.gmra.mxu3 %vm1148_vm1, %v263_v37 }
 0x196   : > { %1368 = vmatmul.msk.f32.gmra.mxu2 %vm1148_vm1, %v264_v53 }
 0x19a   : > { %1372 = vmatmul.msk.f32.gmra.mxu3 %vm1148_vm1, %v264_v53 }
 0x201   : > { %v1178_v29 = vpop.f32.mrf.mxu2 }
 0x202   : > { %v1179_v7 = vadd.f32 %v1178_v29, %v1131_v1 }
 0x204   : > { %v1219_v52 = vadd.f32 %v1466_v48, %v1179_v7 }
 0x205   : > { %v1207_v26 = vpop.f32.mrf.mxu3 }
 0x206   : > { %1227 = vst [vmem:[%s2401_s10] sm:$0xff] %v1219_v52  ;;  %v1208_v11 = vadd.f32 %v1207_v26, %v1131_v1 }
 0x208   : > { %v1220_v39 = vadd.f32 %v1467_v60, %v1208_v11 }
 0x209   : > { %v1181_v55 = vpop.f32.mrf.mxu2 }
 0x20a   : > { %v1182_v61 = vadd.f32 %v1181_v55, %v1136_v14  ;;  %1228 = vst [vmem:[%s2401_s10 + $0x8] sm:$0xff] %v1220_v39 }
 0x20c   : > { %v1221_v45 = vadd.f32 %v1468_v28, %v1182_v61 }
 0x20d   : > { %v1210_v35 = vpop.f32.mrf.mxu3 }
 0x20e   : > { %1229 = vst [vmem:[%s2401_s10 + $0x10] sm:$0xff] %v1221_v45  ;;  %v1211_v27 = vadd.f32 %v1210_v35, %v1136_v14 }
 0x210   : > { %v1222_v46 = vadd.f32 %v1469_v47, %v1211_v27 }
 0x211   : > { %v1184_v25 = vpop.f32.mrf.mxu2 }
 0x212   : > { %v1185_v3 = vadd.f32 %v1184_v25, %v1141_v8  ;;  %1230 = vst [vmem:[%s2401_s10 + $0x18] sm:$0xff] %v1222_v46 }
 0x214   : > { %v1223_v63 = vadd.f32 %v1470_v33, %v1185_v3 }
 0x215   : > { %v1213_v44 = vpop.f32.mrf.mxu3 }
 0x216   : > { %1231 = vst [vmem:[%s2401_s10 + $0x20] sm:$0xff] %v1223_v63  ;;  %v1214_v43 = vadd.f32 %v1213_v44, %v1141_v8 }
 0x218   : > { %v1224_v54 = vadd.f32 %v1471_v57, %v1214_v43 }
 0x219   : > { %v1187_v30 = vpop.f32.mrf.mxu2 }
 0x21a   : > { %v1188_v38 = vadd.f32 %v1187_v30, %v1146_v36  ;;  %1232 = vst [vmem:[%s2401_s10 + $0x28] sm:$0xff] %v1224_v54 }
 0x21c   : > { %v1225_v15 = vadd.f32 %v1472_v62, %v1188_v38 }
 0x21d   : > { %v1216_v40 = vpop.f32.mrf.mxu3 }
 0x21e   : > { %1233 = vst [vmem:[%s2401_s10 + $0x30] sm:$0xff] %v1225_v15  ;;  %v1217_v16 = vadd.f32 %v1216_v40, %v1146_v36 }
 0x220   : > { %v1226_v59 = vadd.f32 %v1473_v34, %v1217_v16 }
 0x222   : > { %1234 = vst [vmem:[%s2401_s10 + $0x38] sm:$0xff] %v1226_v59 }
 0x223   : > { %1531 = shalt.err (!%p1528_p4)
}
 0x224   : > { %s1575_s12 = smov 256   ;;  %s1576_s25 = smov 16  }
 0x225   : > { %1382 = dma.vmem_to_hbm [thread:$0]  (%p1657_p11), %s1249_s29, 1024, %s1251_s22, %s1236_s13, %s1575_s12, %s1575_s12, %s1576_s25  }
 0x226 PF: > { %s1265_s10 = sand.u32 1, %s1558_s18   ;;  %p2527_p7 = scmp.ge.s32.totalorder %s1570_s21, 2 }
 0x227   : > { %s1266_s14 = scalar_lea.sflag [#allocation4], %s1265_s10 }
 0x228   : > { %p1389_p5 = pnand %p2527_p7, %p1661_p12 }
 0x22a   : > { %p1390_p8 = pneg %p1389_p5 }
 0x22c   : > { %1553 = dma.done.wait (%p1390_p8), %s1266_s14, 1024  }
 0x22d   : > { %1555 = vsyncadd (%p1390_p8), %s1266_s14, 4294966272  ;;  %p18_p10 = scmp.ge.s32.totalorder %s1632_s24, 4   ;;  %s2528_s18 = smov %s1562_s19 }
 0x22e   : > { %s2529_s19 = smov %s1566_s20  ;;  %s2530_s20 = smov %s1644_s27 }
 0x22f   : > { %s2531_s21 = smov %s1632_s24  ;;  %20 = sbr.rel (!%p18_p10) target bundleno = 5 (0x5), region = 85 }
 0x234   :  { %1272 = vsyncpa [#allocation3], 1 }
 0x235   :  { %1274 = vsyncpa [#allocation3 + $0x1], 1 }
 0x236   :  { %1275 = vsyncpa [#allocation4], 1 }
 0x237   :  { %1277 = vsyncpa [#allocation4 + $0x1], 1 }

</bundles_post_ra>
